<compile_context>
chip_gen: v7x
topology: tpu7x:2x2x1
jax: 0.10.0
libtpu: 0.0.40
codegen_flags: <defaults>
</compile_context>

<pallas_src>
import functools

import numpy as np
import jax
import jax.numpy as jnp
from jax import lax
from jax.experimental import pallas as pl
from jax.experimental.pallas import tpu as pltpu

EPS = 1e-5


# ------------------------------ Pallas kernel -------------------------------


def _down_fused_kernel(x_ref, w1_ref, b1_ref, w2_ref, b2_ref, o_ref,
                       pad1_ref, pad2_ref, *, nb, dp, hp, cin, cout):
    # x_ref   : (nb, 2*dp, 2*hp, cin)   channels-last input slab (W folded into B)
    # w1_ref  : (3, 3*cin, cout)        conv1 taps, kd-major / (kh,ci) rows, BN1 folded
    # b1_ref  : (1, cout)               folded BN1 bias (includes conv1 bias)
    # w2_ref  : (3, 3*cout, cout)       conv2 taps, BN2 scale folded
    # b2_ref  : (cout, 1)               folded BN2 bias (lane-broadcast orientation)
    # o_ref   : (cout, nb*dp*hp)        lane-dense output slab
    # pad*_ref: VMEM scratch (nb, dp+2, hp+2, c) zero-halo conv inputs

    # ---- 2x2 max-pool over (D, H), entirely in VMEM -------------------------
    xh = jnp.maximum(x_ref[:, :, pl.ds(0, hp, 2), :],
                     x_ref[:, :, pl.ds(1, hp, 2), :])            # (nb, 2*dp, hp, cin)
    pooled = jnp.max(xh.reshape(nb, dp, 2, hp, cin), axis=2)     # (nb, dp, hp, cin)

    def conv_acc(pad_ref, y, w_ref, c):
        # One aligned full-block zero + one interior store (no per-column halo
        # writes).  Done every step -> correct per-core scratch under "parallel".
        pad_ref[...] = jnp.zeros_like(pad_ref)
        pad_ref[:, 1:dp + 1, 1:hp + 1, :] = y
        # kh-slab: 3 shifted reads + one 3-way lane concat (was 9 + 9-way).
        slab = jnp.concatenate(
            [pad_ref[:, :, kh:kh + hp, :] for kh in range(3)],
            axis=-1)                                             # (nb, dp+2, hp, 3c)

        def lhs(kd):  # kd taps are free leading-dim slices of the slab
            return slab[:, kd:kd + dp, :, :].reshape(nb * dp * hp, 3 * c)

        acc = jnp.dot(lhs(0), w_ref[0], preferred_element_type=jnp.float32)
        acc = acc + jnp.dot(lhs(1), w_ref[1], preferred_element_type=jnp.float32)
        acc = acc + jnp.dot(lhs(2), w_ref[2], preferred_element_type=jnp.float32)
        return acc                                               # (nb*dp*hp, cout)

    # conv1 + BN1 + ReLU (result never leaves VMEM, stays channels-last for conv2)
    y1 = jnp.maximum(conv_acc(pad1_ref, pooled, w1_ref, cin) + b1_ref[...], 0.0)

    # conv2, then transpose so bias/ReLU and the store are lane-dense
    y2 = conv_acc(pad2_ref, y1.reshape(nb, dp, hp, cout), w2_ref, cout)
    o_ref[...] = jnp.maximum(y2.T + b2_ref[...], 0.0)            # (cout, nb*dp*hp)


# -------------------------------- wrapper ------------------------------------


def _vmem_capacity_bytes():
    """Per-TensorCore VMEM; conservative v7x fallback if the query is unavailable."""
    try:
        info = pltpu.get_tpu_info()
        cap = int(getattr(info, "vmem_capacity_bytes", 0) or 0)
        if cap > 0:
            return cap
    except Exception:
        pass
    return 64 << 20


def _pick_nb(B, D, H, cin, cout, vmem_budget):
    """Pick batch-rows-per-step: divides B, keeps the lane-dense output block
    128-aligned, fits a padding-corrected VMEM estimate, and prefers >= 8 grid
    steps (DMA overlap + both v7x cores) before growing the tile."""
    dp, hp = D // 2, H // 2
    lane, f32 = 128, 4
    sub = lambda r: -(-r // 8) * 8
    # Padding-corrected per-nb bytes: channel-minor values occupy full 128-lane
    # vregs; BlockSpec double-buffers the input and output blocks.
    per_nb = f32 * (
        2 * lane * D * H                                  # input block x2 buffers
        + lane * (D * hp + dp * hp)                       # pool taps + pooled value
        + 2 * lane * (dp + 2) * sub(hp + 2)               # zero-halo scratch (2 convs)
        + 2 * lane * (sub(dp + 2) * hp + sub(dp) * hp)    # kh-slab + matmul acc (2 convs)
        + 2 * 2 * sub(cout) * dp * hp                     # lane-dense output x2 buffers
    )
    per_nb = int(per_nb * 1.5)                            # headroom for Mosaic temps

    def ok(nb):
        return (B % nb == 0
                and (nb * dp * hp % 128 == 0 or nb == B)  # lane-dense out block constraint
                and nb * per_nb <= vmem_budget)

    cands = [nb for nb in range(1, B + 1) if ok(nb)]
    if not cands:
        return B                                          # degenerate fallback
    # maximize grid steps first (capped at 8), then tile size
    return max(cands, key=lambda nb: (min(B // nb, 8), nb))


def down_forward(x, w1, b1, w2, b2, *, nb=None):
    """x: NCDHW float32 -> NCDHW float32 (D, H halved by the pool).
    w1: (3, 3*Cin, Cout), w2: (3, 3*Cout, Cout) folded im2col weights (BN scale
    folded in); b1, b2: (Cout,) folded biases."""
    N, C, D, H, W = x.shape
    assert D % 2 == 0 and H % 2 == 0, "Down assumes even D, H (MaxPool3d floor mode)"
    dp, hp = D // 2, H // 2
    cin, cout = C, w2.shape[-1]
    B = N * W

    # Layout glue: NCDHW -> (B = N*W, D, H, C) channels-last (one input-sized copy).
    x_cl = jnp.transpose(x, (0, 4, 2, 3, 1)).reshape(B, D, H, C)

    vmem_cap = _vmem_capacity_bytes()
    vmem_limit = max(16 << 20, min(vmem_cap * 3 // 4, 96 << 20))
    if nb is None:
        nb = _pick_nb(B, D, H, cin, cout, vmem_budget=vmem_limit // 2)

    kernel = functools.partial(_down_fused_kernel, nb=nb, dp=dp, hp=hp,
                               cin=cin, cout=cout)
    out = pl.pallas_call(
        kernel,
        out_shape=jax.ShapeDtypeStruct((cout, B * dp * hp), jnp.float32),
        grid_spec=pltpu.PrefetchScalarGridSpec(
            num_scalar_prefetch=0,
            grid=(B // nb,),
            in_specs=[
                pl.BlockSpec((nb, D, H, cin), lambda b: (b, 0, 0, 0)),
                pl.BlockSpec((3, 3 * cin, cout), lambda b: (0, 0, 0)),
                pl.BlockSpec((1, cout), lambda b: (0, 0)),
                pl.BlockSpec((3, 3 * cout, cout), lambda b: (0, 0, 0)),
                pl.BlockSpec((cout, 1), lambda b: (0, 0)),
            ],
            out_specs=pl.BlockSpec((cout, nb * dp * hp), lambda b: (0, b)),
            scratch_shapes=[
                pltpu.VMEM((nb, dp + 2, hp + 2, cin), jnp.float32),
                pltpu.VMEM((nb, dp + 2, hp + 2, cout), jnp.float32),
            ],
        ),
        compiler_params=pltpu.CompilerParams(
            dimension_semantics=("parallel",),
            vmem_limit_bytes=int(vmem_limit)),
    )(x_cl, w1, b1.reshape(1, cout), w2, b2.reshape(cout, 1))

    # lane-dense slab -> NCDHW (quarter-size layout glue in XLA)
    return out.reshape(cout, N, W, dp, hp).transpose(1, 0, 3, 4, 2)


# ----------------------- parameter folding (eval-mode BN) --------------------


def _fold(Wc, cb, g, be, m, v):
    """PyTorch conv weight (Cout,Cin,3,3,1) + conv bias + eval-mode BN ->
    kd-major im2col weight (3, 3*Cin, Cout) with BN scale folded into the
    columns, and a (Cout,) bias, so the kernel epilogue is just `+ bias; ReLU`."""
    cout, cin = Wc.shape[0], Wc.shape[1]
    scale = g / jnp.sqrt(v + EPS)                              # (cout,)
    wk = jnp.transpose(Wc[:, :, :, :, 0], (2, 3, 1, 0))        # (kd, kh, ci, co)
    wk = (wk * scale).reshape(3, 3 * cin, cout)
    bias = (cb - m) * scale + be                               # (cout,)
    return wk, bias


# ----------------------- pure-JAX reference (checking) -----------------------


def ref_forward(x, W1, cb1, g1, be1, m1, v1, W2, cb2, g2, be2, m2, v2):
    xp = lax.reduce_window(x, -jnp.inf, lax.max,
                           (1, 1, 2, 2, 1), (1, 1, 2, 2, 1), "VALID")

    def block(y, Wc, cb, g, be, m, v):
        y = lax.conv_general_dilated(
            y, Wc, window_strides=(1, 1, 1),
            padding=((1, 1), (1, 1), (0, 0)),
            dimension_numbers=("NCDHW", "OIDHW", "NCDHW"))
        y = y + cb.reshape(1, -1, 1, 1, 1)
        y = (y - m.reshape(1, -1, 1, 1, 1)) / jnp.sqrt(
            v.reshape(1, -1, 1, 1, 1) + EPS)
        y = y * g.reshape(1, -1, 1, 1, 1) + be.reshape(1, -1, 1, 1, 1)
        return jnp.maximum(y, 0.0)

    y = block(xp, W1, cb1, g1, be1, m1, v1)
    return block(y, W2, cb2, g2, be2, m2, v2)


# ---------------------------------- main --------------------------------------


if __name__ == "__main__":
    N, Cin, D, H, W = 2, 4, 16, 16, 4
    Cout = 8

    key = jax.random.PRNGKey(0)
    ks = jax.random.split(key, 13)
    x = jax.random.normal(ks[0], (N, Cin, D, H, W), jnp.float32)

    W1 = jax.random.normal(ks[1], (Cout, Cin, 3, 3, 1), jnp.float32) * 0.2
    cb1 = jax.random.normal(ks[2], (Cout,), jnp.float32) * 0.1
    g1 = jax.random.uniform(ks[3], (Cout,), jnp.float32, 0.5, 1.5)
    be1 = jax.random.normal(ks[4], (Cout,), jnp.float32) * 0.1
    m1 = jax.random.normal(ks[5], (Cout,), jnp.float32) * 0.1
    v1 = jax.random.uniform(ks[6], (Cout,), jnp.float32, 0.5, 1.5)

    W2 = jax.random.normal(ks[7], (Cout, Cout, 3, 3, 1), jnp.float32) * 0.2
    cb2 = jax.random.normal(ks[8], (Cout,), jnp.float32) * 0.1
    g2 = jax.random.uniform(ks[9], (Cout,), jnp.float32, 0.5, 1.5)
    be2 = jax.random.normal(ks[10], (Cout,), jnp.float32) * 0.1
    m2 = jax.random.normal(ks[11], (Cout,), jnp.float32) * 0.1
    v2 = jax.random.uniform(ks[12], (Cout,), jnp.float32, 0.5, 1.5)

    w1k, b1k = _fold(W1, cb1, g1, be1, m1, v1)
    w2k, b2k = _fold(W2, cb2, g2, be2, m2, v2)

    out = jax.jit(down_forward)(x, w1k, b1k, w2k, b2k)
    out = jax.block_until_ready(out)

    ref = ref_forward(x, W1, cb1, g1, be1, m1, v1, W2, cb2, g2, be2, m2, v2)
    np.testing.assert_allclose(np.asarray(out), np.asarray(ref),
                               atol=2e-4, rtol=2e-4)
    print("KERNEL_OK")
</pallas_src>

<mosaic_0001>
module attributes {stable_mosaic.version = 11 : i64} {
  func.func @_down_fused_kernel(%arg0: i32, %arg1: memref<2x16x16x4xf32, #tpu.memory_space<vmem>>, %arg2: memref<3x12x8xf32, #tpu.memory_space<vmem>>, %arg3: memref<1x8xf32, #tpu.memory_space<vmem>>, %arg4: memref<3x24x8xf32, #tpu.memory_space<vmem>>, %arg5: memref<8x1xf32, #tpu.memory_space<vmem>>, %arg6: memref<8x128xf32, #tpu.memory_space<vmem>>, %arg7: memref<2x10x10x4xf32, #tpu.memory_space<vmem>>, %arg8: memref<2x10x10x8xf32, #tpu.memory_space<vmem>>) attributes {dimension_semantics = [#tpu.dimension_semantics<parallel>], iteration_bounds = array<i64: 4>, scalar_prefetch = 0 : i64, scratch_operands = 2 : i64, tpu.core_type = #tpu.core_type<tc>, window_params = [{transform_indices = @transform_0, window_bounds = array<i64: 2, 16, 16, 4>}, {pipeline_mode = #tpu.pipeline_mode<synchronous>, transform_indices = @transform_1, window_bounds = array<i64: 3, 12, 8>}, {pipeline_mode = #tpu.pipeline_mode<synchronous>, transform_indices = @transform_2, window_bounds = array<i64: 1, 8>}, {pipeline_mode = #tpu.pipeline_mode<synchronous>, transform_indices = @transform_3, window_bounds = array<i64: 3, 24, 8>}, {pipeline_mode = #tpu.pipeline_mode<synchronous>, transform_indices = @transform_4, window_bounds = array<i64: 8, 1>}, {transform_indices = @transform_5, window_bounds = array<i64: 8, 128>}]} {
    %c0 = arith.constant 0 : index
    %c0_0 = arith.constant 0 : index
    %c0_1 = arith.constant 0 : index
    %c0_2 = arith.constant 0 : index
    %0 = tpu.strided_load %arg1[%c0, %c0_0, %c0_1, %c0_2] {strides = array<i32: 1, 1, 2, 1>} : memref<2x16x16x4xf32, #tpu.memory_space<vmem>>, vector<2x16x8x4xf32>
    %c0_3 = arith.constant 0 : index
    %c0_4 = arith.constant 0 : index
    %c1 = arith.constant 1 : index
    %c0_5 = arith.constant 0 : index
    %1 = tpu.strided_load %arg1[%c0_3, %c0_4, %c1, %c0_5] {strides = array<i32: 1, 1, 2, 1>} : memref<2x16x16x4xf32, #tpu.memory_space<vmem>>, vector<2x16x8x4xf32>
    %2 = arith.maximumf %0, %1 : vector<2x16x8x4xf32>
    %3 = vector.shape_cast %2 : vector<2x16x8x4xf32> to vector<2x8x2x8x4xf32>
    %cst = arith.constant dense<0xFF800000> : vector<2x8x8x4xf32>
    %4 = vector.multi_reduction <maximumf>, %3, %cst [2] : vector<2x8x2x8x4xf32> to vector<2x8x8x4xf32>
    %cst_6 = arith.constant 0.000000e+00 : f32
    %5 = vector.broadcast %cst_6 : f32 to vector<2x10x10x4xf32>
    %c0_7 = arith.constant 0 : index
    %c0_8 = arith.constant 0 : index
    %c0_9 = arith.constant 0 : index
    %c0_10 = arith.constant 0 : index
    %6 = vector.load %arg7[%c0_7, %c0_8, %c0_9, %c0_10] : memref<2x10x10x4xf32, #tpu.memory_space<vmem>>, vector<2x10x10x4xf32>
    tpu.vector_store %arg7[%c0_7, %c0_8, %c0_9, %c0_10], %5 {strides = array<i32>} : memref<2x10x10x4xf32, #tpu.memory_space<vmem>>, vector<2x10x10x4xf32>,
    %c0_11 = arith.constant 0 : index
    %c1_12 = arith.constant 1 : index
    %c1_13 = arith.constant 1 : index
    %c0_14 = arith.constant 0 : index
    %7 = vector.load %arg7[%c0_11, %c1_12, %c1_13, %c0_14] : memref<2x10x10x4xf32, #tpu.memory_space<vmem>>, vector<2x8x8x4xf32>
    tpu.vector_store %arg7[%c0_11, %c1_12, %c1_13, %c0_14], %4 {strides = array<i32>} : memref<2x10x10x4xf32, #tpu.memory_space<vmem>>, vector<2x8x8x4xf32>,
    %c0_15 = arith.constant 0 : index
    %c0_16 = arith.constant 0 : index
    %c0_17 = arith.constant 0 : index
    %c0_18 = arith.constant 0 : index
    %8 = vector.load %arg7[%c0_15, %c0_16, %c0_17, %c0_18] : memref<2x10x10x4xf32, #tpu.memory_space<vmem>>, vector<2x10x8x4xf32>
    %c0_19 = arith.constant 0 : index
    %c0_20 = arith.constant 0 : index
    %c1_21 = arith.constant 1 : index
    %c0_22 = arith.constant 0 : index
    %9 = vector.load %arg7[%c0_19, %c0_20, %c1_21, %c0_22] : memref<2x10x10x4xf32, #tpu.memory_space<vmem>>, vector<2x10x8x4xf32>
    %c0_23 = arith.constant 0 : index
    %c0_24 = arith.constant 0 : index
    %c2 = arith.constant 2 : index
    %c0_25 = arith.constant 0 : index
    %10 = vector.load %arg7[%c0_23, %c0_24, %c2, %c0_25] : memref<2x10x10x4xf32, #tpu.memory_space<vmem>>, vector<2x10x8x4xf32>
    %11 = tpu.concatenate %8, %9, %10 in 3 : vector<2x10x8x4xf32>, vector<2x10x8x4xf32>, vector<2x10x8x4xf32> -> vector<2x10x8x12xf32>
    %12 = vector.extract_strided_slice %11 {offsets = [0, 0, 0, 0], sizes = [2, 8, 8, 12], strides = [1, 1, 1, 1]} : vector<2x10x8x12xf32> to vector<2x8x8x12xf32>
    %13 = vector.shape_cast %12 : vector<2x8x8x12xf32> to vector<128x12xf32>
    %c0_26 = arith.constant 0 : index
    %c0_27 = arith.constant 0 : index
    %c0_28 = arith.constant 0 : index
    %14 = vector.load %arg2[%c0_26, %c0_27, %c0_28] : memref<3x12x8xf32, #tpu.memory_space<vmem>>, vector<1x12x8xf32>
    %15 = vector.shape_cast %14 : vector<1x12x8xf32> to vector<12x8xf32>
    %cst_29 = arith.constant dense<0.000000e+00> : vector<128x8xf32>
    %16 = tpu.matmul %13, %15, %cst_29 {dimension_numbers = #tpu.dot_dimension_numbers<[1], [0], [0], [1], [0, 0, 1, 1], [], []>} : vector<128x12xf32>, vector<12x8xf32>, vector<128x8xf32> -> vector<128x8xf32>
    %17 = vector.extract_strided_slice %11 {offsets = [0, 1, 0, 0], sizes = [2, 8, 8, 12], strides = [1, 1, 1, 1]} : vector<2x10x8x12xf32> to vector<2x8x8x12xf32>
    %18 = vector.shape_cast %17 : vector<2x8x8x12xf32> to vector<128x12xf32>
    %c1_30 = arith.constant 1 : index
    %c0_31 = arith.constant 0 : index
    %c0_32 = arith.constant 0 : index
    %19 = vector.load %arg2[%c1_30, %c0_31, %c0_32] : memref<3x12x8xf32, #tpu.memory_space<vmem>>, vector<1x12x8xf32>
    %20 = vector.shape_cast %19 : vector<1x12x8xf32> to vector<12x8xf32>
    %cst_33 = arith.constant dense<0.000000e+00> : vector<128x8xf32>
    %21 = tpu.matmul %18, %20, %cst_33 {dimension_numbers = #tpu.dot_dimension_numbers<[1], [0], [0], [1], [0, 0, 1, 1], [], []>} : vector<128x12xf32>, vector<12x8xf32>, vector<128x8xf32> -> vector<128x8xf32>
    %22 = arith.addf %16, %21 : vector<128x8xf32>
    %23 = vector.extract_strided_slice %11 {offsets = [0, 2, 0, 0], sizes = [2, 8, 8, 12], strides = [1, 1, 1, 1]} : vector<2x10x8x12xf32> to vector<2x8x8x12xf32>
    %24 = vector.shape_cast %23 : vector<2x8x8x12xf32> to vector<128x12xf32>
    %c2_34 = arith.constant 2 : index
    %c0_35 = arith.constant 0 : index
    %c0_36 = arith.constant 0 : index
    %25 = vector.load %arg2[%c2_34, %c0_35, %c0_36] : memref<3x12x8xf32, #tpu.memory_space<vmem>>, vector<1x12x8xf32>
    %26 = vector.shape_cast %25 : vector<1x12x8xf32> to vector<12x8xf32>
    %cst_37 = arith.constant dense<0.000000e+00> : vector<128x8xf32>
    %27 = tpu.matmul %24, %26, %cst_37 {dimension_numbers = #tpu.dot_dimension_numbers<[1], [0], [0], [1], [0, 0, 1, 1], [], []>} : vector<128x12xf32>, vector<12x8xf32>, vector<128x8xf32> -> vector<128x8xf32>
    %28 = arith.addf %22, %27 : vector<128x8xf32>
    %c0_38 = arith.constant 0 : index
    %c0_39 = arith.constant 0 : index
    %29 = vector.load %arg3[%c0_38, %c0_39] : memref<1x8xf32, #tpu.memory_space<vmem>>, vector<1x8xf32>
    %30 = vector.broadcast %29 : vector<1x8xf32> to vector<128x8xf32>
    %31 = arith.addf %28, %30 : vector<128x8xf32>
    %cst_40 = arith.constant 0.000000e+00 : f32
    %32 = vector.broadcast %cst_40 : f32 to vector<128x8xf32>
    %33 = arith.maximumf %31, %32 : vector<128x8xf32>
    %34 = vector.shape_cast %33 : vector<128x8xf32> to vector<2x8x8x8xf32>
    %cst_41 = arith.constant 0.000000e+00 : f32
    %35 = vector.broadcast %cst_41 : f32 to vector<2x10x10x8xf32>
    %c0_42 = arith.constant 0 : index
    %c0_43 = arith.constant 0 : index
    %c0_44 = arith.constant 0 : index
    %c0_45 = arith.constant 0 : index
    %36 = vector.load %arg8[%c0_42, %c0_43, %c0_44, %c0_45] : memref<2x10x10x8xf32, #tpu.memory_space<vmem>>, vector<2x10x10x8xf32>
    tpu.vector_store %arg8[%c0_42, %c0_43, %c0_44, %c0_45], %35 {strides = array<i32>} : memref<2x10x10x8xf32, #tpu.memory_space<vmem>>, vector<2x10x10x8xf32>,
    %c0_46 = arith.constant 0 : index
    %c1_47 = arith.constant 1 : index
    %c1_48 = arith.constant 1 : index
    %c0_49 = arith.constant 0 : index
    %37 = vector.load %arg8[%c0_46, %c1_47, %c1_48, %c0_49] : memref<2x10x10x8xf32, #tpu.memory_space<vmem>>, vector<2x8x8x8xf32>
    tpu.vector_store %arg8[%c0_46, %c1_47, %c1_48, %c0_49], %34 {strides = array<i32>} : memref<2x10x10x8xf32, #tpu.memory_space<vmem>>, vector<2x8x8x8xf32>,
    %c0_50 = arith.constant 0 : index
    %c0_51 = arith.constant 0 : index
    %c0_52 = arith.constant 0 : index
    %c0_53 = arith.constant 0 : index
    %38 = vector.load %arg8[%c0_50, %c0_51, %c0_52, %c0_53] : memref<2x10x10x8xf32, #tpu.memory_space<vmem>>, vector<2x10x8x8xf32>
    %c0_54 = arith.constant 0 : index
    %c0_55 = arith.constant 0 : index
    %c1_56 = arith.constant 1 : index
    %c0_57 = arith.constant 0 : index
    %39 = vector.load %arg8[%c0_54, %c0_55, %c1_56, %c0_57] : memref<2x10x10x8xf32, #tpu.memory_space<vmem>>, vector<2x10x8x8xf32>
    %c0_58 = arith.constant 0 : index
    %c0_59 = arith.constant 0 : index
    %c2_60 = arith.constant 2 : index
    %c0_61 = arith.constant 0 : index
    %40 = vector.load %arg8[%c0_58, %c0_59, %c2_60, %c0_61] : memref<2x10x10x8xf32, #tpu.memory_space<vmem>>, vector<2x10x8x8xf32>
    %41 = tpu.concatenate %38, %39, %40 in 3 : vector<2x10x8x8xf32>, vector<2x10x8x8xf32>, vector<2x10x8x8xf32> -> vector<2x10x8x24xf32>
    %42 = vector.extract_strided_slice %41 {offsets = [0, 0, 0, 0], sizes = [2, 8, 8, 24], strides = [1, 1, 1, 1]} : vector<2x10x8x24xf32> to vector<2x8x8x24xf32>
    %43 = vector.shape_cast %42 : vector<2x8x8x24xf32> to vector<128x24xf32>
    %c0_62 = arith.constant 0 : index
    %c0_63 = arith.constant 0 : index
    %c0_64 = arith.constant 0 : index
    %44 = vector.load %arg4[%c0_62, %c0_63, %c0_64] : memref<3x24x8xf32, #tpu.memory_space<vmem>>, vector<1x24x8xf32>
    %45 = vector.shape_cast %44 : vector<1x24x8xf32> to vector<24x8xf32>
    %cst_65 = arith.constant dense<0.000000e+00> : vector<128x8xf32>
    %46 = tpu.matmul %43, %45, %cst_65 {dimension_numbers = #tpu.dot_dimension_numbers<[1], [0], [0], [1], [0, 0, 1, 1], [], []>} : vector<128x24xf32>, vector<24x8xf32>, vector<128x8xf32> -> vector<128x8xf32>
    %47 = vector.extract_strided_slice %41 {offsets = [0, 1, 0, 0], sizes = [2, 8, 8, 24], strides = [1, 1, 1, 1]} : vector<2x10x8x24xf32> to vector<2x8x8x24xf32>
    %48 = vector.shape_cast %47 : vector<2x8x8x24xf32> to vector<128x24xf32>
    %c1_66 = arith.constant 1 : index
    %c0_67 = arith.constant 0 : index
    %c0_68 = arith.constant 0 : index
    %49 = vector.load %arg4[%c1_66, %c0_67, %c0_68] : memref<3x24x8xf32, #tpu.memory_space<vmem>>, vector<1x24x8xf32>
    %50 = vector.shape_cast %49 : vector<1x24x8xf32> to vector<24x8xf32>
    %cst_69 = arith.constant dense<0.000000e+00> : vector<128x8xf32>
    %51 = tpu.matmul %48, %50, %cst_69 {dimension_numbers = #tpu.dot_dimension_numbers<[1], [0], [0], [1], [0, 0, 1, 1], [], []>} : vector<128x24xf32>, vector<24x8xf32>, vector<128x8xf32> -> vector<128x8xf32>
    %52 = arith.addf %46, %51 : vector<128x8xf32>
    %53 = vector.extract_strided_slice %41 {offsets = [0, 2, 0, 0], sizes = [2, 8, 8, 24], strides = [1, 1, 1, 1]} : vector<2x10x8x24xf32> to vector<2x8x8x24xf32>
    %54 = vector.shape_cast %53 : vector<2x8x8x24xf32> to vector<128x24xf32>
    %c2_70 = arith.constant 2 : index
    %c0_71 = arith.constant 0 : index
    %c0_72 = arith.constant 0 : index
    %55 = vector.load %arg4[%c2_70, %c0_71, %c0_72] : memref<3x24x8xf32, #tpu.memory_space<vmem>>, vector<1x24x8xf32>
    %56 = vector.shape_cast %55 : vector<1x24x8xf32> to vector<24x8xf32>
    %cst_73 = arith.constant dense<0.000000e+00> : vector<128x8xf32>
    %57 = tpu.matmul %54, %56, %cst_73 {dimension_numbers = #tpu.dot_dimension_numbers<[1], [0], [0], [1], [0, 0, 1, 1], [], []>} : vector<128x24xf32>, vector<24x8xf32>, vector<128x8xf32> -> vector<128x8xf32>
    %58 = arith.addf %52, %57 : vector<128x8xf32>
    %59 = tpu.transpose %58, [1, 0] : vector<128x8xf32> -> vector<8x128xf32>
    %c0_74 = arith.constant 0 : index
    %c0_75 = arith.constant 0 : index
    %60 = vector.load %arg5[%c0_74, %c0_75] : memref<8x1xf32, #tpu.memory_space<vmem>>, vector<8x1xf32>
    %61 = vector.broadcast %60 : vector<8x1xf32> to vector<8x128xf32>
    %62 = arith.addf %59, %61 : vector<8x128xf32>
    %cst_76 = arith.constant 0.000000e+00 : f32
    %63 = vector.broadcast %cst_76 : f32 to vector<8x128xf32>
    %64 = arith.maximumf %62, %63 : vector<8x128xf32>
    %c0_77 = arith.constant 0 : index
    %c0_78 = arith.constant 0 : index
    %65 = vector.load %arg6[%c0_77, %c0_78] : memref<8x128xf32, #tpu.memory_space<vmem>>, vector<8x128xf32>
    tpu.vector_store %arg6[%c0_77, %c0_78], %64 {strides = array<i32>} : memref<8x128xf32, #tpu.memory_space<vmem>>, vector<8x128xf32>,
    return
  }
  func.func @transform_0(%arg0: i32) -> (i32, i32, i32, i32) {
    %c0_i32 = arith.constant 0 : i32
    %c0_i32_0 = arith.constant 0 : i32
    %c0_i32_1 = arith.constant 0 : i32
    %c0_i32_2 = arith.constant 0 : i32
    return %arg0, %c0_i32, %c0_i32_0, %c0_i32_1 : i32, i32, i32, i32
  }
  func.func @transform_1(%arg0: i32) -> (i32, i32, i32) {
    %c0_i32 = arith.constant 0 : i32
    %c0_i32_0 = arith.constant 0 : i32
    %c0_i32_1 = arith.constant 0 : i32
    %c0_i32_2 = arith.constant 0 : i32
    return %c0_i32, %c0_i32_0, %c0_i32_1 : i32, i32, i32
  }
  func.func @transform_2(%arg0: i32) -> (i32, i32) {
    %c0_i32 = arith.constant 0 : i32
    %c0_i32_0 = arith.constant 0 : i32
    %c0_i32_1 = arith.constant 0 : i32
    return %c0_i32, %c0_i32_0 : i32, i32
  }
  func.func @transform_3(%arg0: i32) -> (i32, i32, i32) {
    %c0_i32 = arith.constant 0 : i32
    %c0_i32_0 = arith.constant 0 : i32
    %c0_i32_1 = arith.constant 0 : i32
    %c0_i32_2 = arith.constant 0 : i32
    return %c0_i32, %c0_i32_0, %c0_i32_1 : i32, i32, i32
  }
  func.func @transform_4(%arg0: i32) -> (i32, i32) {
    %c0_i32 = arith.constant 0 : i32
    %c0_i32_0 = arith.constant 0 : i32
    %c0_i32_1 = arith.constant 0 : i32
    return %c0_i32, %c0_i32_0 : i32, i32
  }
  func.func @transform_5(%arg0: i32) -> (i32, i32) {
    %c0_i32 = arith.constant 0 : i32
    %c0_i32_0 = arith.constant 0 : i32
    return %c0_i32, %arg0 : i32, i32
  }
}

</mosaic_0001>

<bundles_post_ra>
// kernel: down_forward.1
= control target key start
LH: loop header
LB: loop body
LE: loop exit
PB: predicated region body
PF: predicated region fallthrough
CT: control target
= control target key end

     0   :  { %s2883_s18 = smov 0   ;;  %s3683_s0 = inlined_call_operand.vmem [shape: f32[8,16,16,4], index: 0, kind: input, shape index: {}]   ;;  %s3684_s1 = inlined_call_operand.vmem [shape: f32[3,12,8], index: 1, kind: input, shape index: {}]   ;;  %s3685_s2 = inlined_call_operand.vmem [shape: f32[1,8], index: 2, kind: input, shape index: {}]   ;;  %s3686_s3 = inlined_call_operand.vmem [shape: f32[3,24,8], index: 3, kind: input, shape index: {}]   ;;  %s3687_s4 = inlined_call_operand.vmem [shape: f32[8,1], index: 4, kind: input, shape index: {}]   ;;  %s3688_s5 = inlined_call_operand.vmem [shape: f32[8,512], index: 5, kind: output, shape index: {}]  }
   0x1 LB: > { %s2889_s19 = sadd.s32 4294967295, %s2845_s18   ;;  %p2264_p0 = scmp.ge.s32.totalorder %s2845_s18, 1  ;;  %s2845_s18 = sphi %s2883_s18, %s15_s18  }
   0x2   : > { %p189_p1 = scmp.lt.s32.totalorder %s2845_s18, 5 }
   0x4   : > { %p190_p2 = pnand %p2264_p0, %p189_p1 }
   0x5   : > { %s2265_s20 = sshll.u32 (!%p190_p2), %s2889_s19, 1  ;;  %vm387_vm0 = vcmask (!%p190_p2), 31744   ;;  %vm437_vm1 = vcmask (!%p190_p2), 25600   ;;  %v2847_v0 = vmov (!%p190_p2), 0.0   ;;  %vm734_vm2 = vcmask (!%p190_p2), 64512   ;;  %s2848_s26 = smov (!%p190_p2), 8  }
   0x6   : > { %193 = sbr.rel (%p190_p2) target bundleno = 1037 (0x40d), region = 40  ;;  %p2896_p3 = scmp.lt.s32.totalorder (!%p190_p2), %s2265_s20, 7  ;;  %439 = vst.msk [vmem:[#allocation2 + $0x10] sm:$0xff] (!%p190_p2), %vm387_vm0, %v2847_v0  ;;  %436 = vst.msk [vmem:[#allocation2] sm:$0xff] (!%p190_p2), %vm387_vm0, %v2847_v0  ;;  %vm809_vm3 = vcmask (!%p190_p2), 1043456   ;;  %vm2850_vm4 = vmmov (!%p190_p2), 1  }
   0x7   : > { %440 = vst.msk [vmem:[#allocation2 + $0x18] sm:$0x3] (!%p190_p2), %vm437_vm1, %v2847_v0  ;;  %438 = vst.msk [vmem:[#allocation2 + $0x8] sm:$0x3] (!%p190_p2), %vm437_vm1, %v2847_v0  ;;  %s2849_s27 = smov (!%p190_p2), 4   ;;  %vm760_vm6 = vcmask (!%p190_p2), 97280  }
   0x8   : > { %441 = vst.msk [vmem:[#allocation2 + $0x20] sm:$0xff] (!%p190_p2), %vm387_vm0, %v2847_v0  ;;  %443 = vst.msk [vmem:[#allocation2 + $0x30] sm:$0xff] (!%p190_p2), %vm387_vm0, %v2847_v0  ;;  %vm1325_vm7 = vcmask (!%p190_p2), 58368   ;;  %vm1622_vm8 = vcmask (!%p190_p2), 130048   ;;  %vm1650_vm9 = vcmask (!%p190_p2), 195584   ;;  %p224_p4 = scmp.lt.s32.totalorder (!%p190_p2), %s2889_s19, 3 }
   0x9   : > { %442 = vst.msk [vmem:[#allocation2 + $0x28] sm:$0x3] (!%p190_p2), %vm437_vm1, %v2847_v0  ;;  %444 = vst.msk [vmem:[#allocation2 + $0x38] sm:$0x3] (!%p190_p2), %vm437_vm1, %v2847_v0 }
   0xa   : > { %445 = vst.msk [vmem:[#allocation2 + $0x40] sm:$0xff] (!%p190_p2), %vm387_vm0, %v2847_v0  ;;  %447 = vst.msk [vmem:[#allocation2 + $0x50] sm:$0xff] (!%p190_p2), %vm387_vm0, %v2847_v0 }
   0xb   : > { %446 = vst.msk [vmem:[#allocation2 + $0x48] sm:$0x3] (!%p190_p2), %vm437_vm1, %v2847_v0  ;;  %448 = vst.msk [vmem:[#allocation2 + $0x58] sm:$0x3] (!%p190_p2), %vm437_vm1, %v2847_v0 }
   0xc   : > { %449 = vst.msk [vmem:[#allocation2 + $0x60] sm:$0xff] (!%p190_p2), %vm387_vm0, %v2847_v0  ;;  %451 = vst.msk [vmem:[#allocation2 + $0x70] sm:$0xff] (!%p190_p2), %vm387_vm0, %v2847_v0 }
   0xd   : > { %450 = vst.msk [vmem:[#allocation2 + $0x68] sm:$0x3] %vm437_vm1, %v2847_v0  ;;  %452 = vst.msk [vmem:[#allocation2 + $0x78] sm:$0x3] %vm437_vm1, %v2847_v0  ;;  %s3693_s20 = smov (!%p2896_p3, %s2265_s20), 7  ;;  %s3695_s19 = smov (!%p224_p4, %s2889_s19), 3 }
   0xe   : > { %453 = vst.msk [vmem:[#allocation2 + $0x80] sm:$0xff] %vm387_vm0, %v2847_v0  ;;  %455 = vst.msk [vmem:[#allocation2 + $0x90] sm:$0xff] %vm387_vm0, %v2847_v0  ;;  %s2444_s22 = sshll.u32 %s3693_s20, 8  ;;  %s2268_s15 = sshll.u32 %s3695_s19, 3 }
   0xf   : > { %454 = vst.msk [vmem:[#allocation2 + $0x88] sm:$0x3] %vm437_vm1, %v2847_v0  ;;  %456 = vst.msk [vmem:[#allocation2 + $0x98] sm:$0x3] %vm437_vm1, %v2847_v0  ;;  %s2987_s25 = scalar_lea.vmem %s3683_s0, %s2444_s22  ;;  %s227_s20 = scalar_lea.vmem %s3688_s5, %s2268_s15 }
  0x10   : > { %457 = vst.msk [vmem:[#allocation2 + $0xa0] sm:$0xff] %vm387_vm0, %v2847_v0  ;;  %459 = vst.msk [vmem:[#allocation2 + $0xb0] sm:$0xff] %vm387_vm0, %v2847_v0  ;;  %v228_v1 = vld [vmem:[%s2987_s25] ss:$2 sm:$0xff]  ;;  %v2269_v2 = vld [vmem:[%s2987_s25 + $0x10] ss:$2 sm:$0xff] }
  0x11   : > { %458 = vst.msk [vmem:[#allocation2 + $0xa8] sm:$0x3] %vm437_vm1, %v2847_v0  ;;  %460 = vst.msk [vmem:[#allocation2 + $0xb8] sm:$0x3] %vm437_vm1, %v2847_v0  ;;  %v2300_v3 = vld [vmem:[%s2987_s25 + $0x1] ss:$2 sm:$0xff] }
  0x12   : > { %461 = vst.msk [vmem:[#allocation2 + $0xc0] sm:$0xff] %vm387_vm0, %v2847_v0  ;;  %463 = vst.msk [vmem:[#allocation2 + $0xd0] sm:$0xff] %vm387_vm0, %v2847_v0  ;;  %v2301_v4 = vld [vmem:[%s2987_s25 + $0x11] ss:$2 sm:$0xff]  ;;  %v355_v5 = vmax.f32 %v228_v1, %v2300_v3  ;;  %v2270_v6 = vld [vmem:[%s2987_s25 + $0x20] ss:$2 sm:$0xff] }
  0x13   : > { %462 = vst.msk [vmem:[#allocation2 + $0xc8] sm:$0x3] %vm437_vm1, %v2847_v0  ;;  %464 = vst.msk [vmem:[#allocation2 + $0xd8] sm:$0x3] %vm437_vm1, %v2847_v0  ;;  %v2271_v7 = vld [vmem:[%s2987_s25 + $0x30] ss:$2 sm:$0xff]  ;;  %v356_v8 = vmax.f32 %v2269_v2, %v2301_v4 }
  0x14   : > { %465 = vst.msk [vmem:[#allocation2 + $0xe0] sm:$0xff] %vm387_vm0, %v2847_v0  ;;  %467 = vst.msk [vmem:[#allocation2 + $0xf0] sm:$0xff] %vm387_vm0, %v2847_v0  ;;  %v2302_v9 = vld [vmem:[%s2987_s25 + $0x21] ss:$2 sm:$0xff]  ;;  %v2303_v10 = vld [vmem:[%s2987_s25 + $0x31] ss:$2 sm:$0xff] }
  0x15   : > { %466 = vst.msk [vmem:[#allocation2 + $0xe8] sm:$0x3] %vm437_vm1, %v2847_v0  ;;  %468 = vst.msk [vmem:[#allocation2 + $0xf8] sm:$0x3] %vm437_vm1, %v2847_v0  ;;  %v2274_v11 = vld [vmem:[%s2987_s25 + $0x60] ss:$2 sm:$0xff]  ;;  %v357_v13 = vmax.f32 %v2270_v6, %v2302_v9  ;;  %v358_v14 = vmax.f32 %v2271_v7, %v2303_v10 }
  0x16   : > { %469 = vst.msk [vmem:[#allocation2 + $0x100] sm:$0xff] %vm387_vm0, %v2847_v0  ;;  %471 = vst.msk [vmem:[#allocation2 + $0x110] sm:$0xff] %vm387_vm0, %v2847_v0  ;;  %v388_v12 = vsel %vm387_vm0, %v355_v5, -inf  ;;  %v2275_v15 = vld [vmem:[%s2987_s25 + $0x70] ss:$2 sm:$0xff]  ;;  %v389_v17 = vsel %vm387_vm0, %v356_v8, -inf }
  0x17   : > { %470 = vst.msk [vmem:[#allocation2 + $0x108] sm:$0x3] %vm437_vm1, %v2847_v0  ;;  %472 = vst.msk [vmem:[#allocation2 + $0x118] sm:$0x3] %vm437_vm1, %v2847_v0  ;;  %v2306_v16 = vld [vmem:[%s2987_s25 + $0x61] ss:$2 sm:$0xff]  ;;  %v390_v21 = vmax.f32 %v388_v12, %v389_v17 }
  0x18   : > { %473 = vst.msk [vmem:[#allocation2 + $0x120] sm:$0xff] %vm387_vm0, %v2847_v0  ;;  %475 = vst.msk [vmem:[#allocation2 + $0x130] sm:$0xff] %vm387_vm0, %v2847_v0  ;;  %v2307_v18 = vld [vmem:[%s2987_s25 + $0x71] ss:$2 sm:$0xff]  ;;  %v361_v19 = vmax.f32 %v2274_v11, %v2306_v16  ;;  %v2272_v20 = vld [vmem:[%s2987_s25 + $0x40] ss:$2 sm:$0xff] }
  0x19   : > { %474 = vst.msk [vmem:[#allocation2 + $0x128] sm:$0x3] %vm437_vm1, %v2847_v0  ;;  %476 = vst.msk [vmem:[#allocation2 + $0x138] sm:$0x3] %vm437_vm1, %v2847_v0  ;;  %v391_v22 = vsel %vm387_vm0, %v357_v13, -inf  ;;  %v392_v23 = vsel %vm387_vm0, %v358_v14, -inf  ;;  %v362_v24 = vmax.f32 %v2275_v15, %v2307_v18 }
  0x1a   : > { %v2273_v25 = vld [vmem:[%s2987_s25 + $0x50] ss:$2 sm:$0xff]  ;;  %v2304_v26 = vld [vmem:[%s2987_s25 + $0x41] ss:$2 sm:$0xff]  ;;  %v393_v27 = vmax.f32 %v391_v22, %v392_v23  ;;  %v397_v28 = vsel %vm387_vm0, %v361_v19, -inf  ;;  %478 = vst.msk [vmem:[#allocation2 + $0x11] sm:$0xff] %vm387_vm0, %v390_v21  ;;  %vm3154_vm5 = vmpackc.low %vm809_vm3, %vm2850_vm4 }
  0x1b   : > { %v2305_v29 = vld [vmem:[%s2987_s25 + $0x51] ss:$2 sm:$0xff]  ;;  %v359_v30 = vmax.f32 %v2272_v20, %v2304_v26  ;;  %v2278_v31 = vld [vmem:[%s2987_s25 + $0xa0] ss:$2 sm:$0xff]  ;;  %v398_v32 = vsel %vm387_vm0, %v362_v24, -inf  ;;  %1324 = vst.msk [vmem:[#allocation3] sm:$0xff] %vm734_vm2, %v2847_v0 }
  0x1c   : > { %v360_v33 = vmax.f32 %v2273_v25, %v2305_v29  ;;  %v2279_v34 = vld [vmem:[%s2987_s25 + $0xb0] ss:$2 sm:$0xff]  ;;  %v2310_v35 = vld [vmem:[%s2987_s25 + $0xa1] ss:$2 sm:$0xff]  ;;  %479 = vst.msk [vmem:[#allocation2 + $0x21] sm:$0xff] %vm387_vm0, %v393_v27  ;;  %v399_v36 = vmax.f32 %v397_v28, %v398_v32 }
  0x1d   : > { %v394_v37 = vsel %vm387_vm0, %v359_v30, -inf  ;;  %v2311_v38 = vld [vmem:[%s2987_s25 + $0xb1] ss:$2 sm:$0xff]  ;;  %v365_v39 = vmax.f32 %v2278_v31, %v2310_v35  ;;  %v2276_v40 = vld [vmem:[%s2987_s25 + $0x80] ss:$2 sm:$0xff]  ;;  %1327 = vst.msk [vmem:[#allocation3 + $0x10] sm:$0xff] %vm734_vm2, %v2847_v0 }
  0x1e   : > { %v395_v41 = vsel %vm387_vm0, %v360_v33, -inf  ;;  %v366_v42 = vmax.f32 %v2279_v34, %v2311_v38  ;;  %v2277_v43 = vld [vmem:[%s2987_s25 + $0x90] ss:$2 sm:$0xff]  ;;  %v2308_v44 = vld [vmem:[%s2987_s25 + $0x81] ss:$2 sm:$0xff]  ;;  %481 = vst.msk [vmem:[#allocation2 + $0x41] sm:$0xff] %vm387_vm0, %v399_v36 }
  0x1f   : > { %v396_v45 = vmax.f32 %v394_v37, %v395_v41  ;;  %v403_v46 = vsel %vm387_vm0, %v365_v39, -inf  ;;  %v2309_v47 = vld [vmem:[%s2987_s25 + $0x91] ss:$2 sm:$0xff]  ;;  %v363_v48 = vmax.f32 %v2276_v40, %v2308_v44  ;;  %v2282_v49 = vld [vmem:[%s2987_s25 + $0xe0] ss:$2 sm:$0xff]  ;;  %1329 = vst.msk [vmem:[#allocation3 + $0x20] sm:$0xff] %vm734_vm2, %v2847_v0 }
  0x20   : > { %v404_v50 = vsel %vm387_vm0, %v366_v42, -inf  ;;  %v364_v51 = vmax.f32 %v2277_v43, %v2309_v47  ;;  %v2283_v52 = vld [vmem:[%s2987_s25 + $0xf0] ss:$2 sm:$0xff]  ;;  %v2314_v53 = vld [vmem:[%s2987_s25 + $0xe1] ss:$2 sm:$0xff]  ;;  %1331 = vst.msk [vmem:[#allocation3 + $0x30] sm:$0xff] %vm734_vm2, %v2847_v0 }
  0x21   : > { %480 = vst.msk [vmem:[#allocation2 + $0x31] sm:$0xff] %vm387_vm0, %v396_v45  ;;  %v405_v54 = vmax.f32 %v403_v46, %v404_v50  ;;  %v400_v55 = vsel %vm387_vm0, %v363_v48, -inf  ;;  %v2315_v56 = vld [vmem:[%s2987_s25 + $0xf1] ss:$2 sm:$0xff]  ;;  %v369_v57 = vmax.f32 %v2282_v49, %v2314_v53  ;;  %v2280_v58 = vld [vmem:[%s2987_s25 + $0xc0] ss:$2 sm:$0xff] }
  0x22   : > { %v401_v59 = vsel %vm387_vm0, %v364_v51, -inf  ;;  %v370_v60 = vmax.f32 %v2283_v52, %v2315_v56  ;;  %v2281_v61 = vld [vmem:[%s2987_s25 + $0xd0] ss:$2 sm:$0xff]  ;;  %v2312_v62 = vld [vmem:[%s2987_s25 + $0xc1] ss:$2 sm:$0xff]  ;;  %1333 = vst.msk [vmem:[#allocation3 + $0x40] sm:$0xff] %vm734_vm2, %v2847_v0 }
  0x23   : > { %v535_v63 = vld [vmem:[#allocation2 + $0x12] sm:$0xff]  ;;  %483 = vst.msk [vmem:[#allocation2 + $0x61] sm:$0xff] %vm387_vm0, %v405_v54  ;;  %v402_v2 = vmax.f32 %v400_v55, %v401_v59  ;;  %v409_v3 = vsel %vm387_vm0, %v369_v57, -inf  ;;  %v367_v5 = vmax.f32 %v2280_v58, %v2312_v62  ;;  %v536_v6 = vld [vmem:[#allocation2 + $0x22] sm:$0xff] }
  0x24   : > { %v515_v1 = vld [vmem:[#allocation2 + $0x11] sm:$0xff]  ;;  %1335 = vst.msk [vmem:[#allocation3 + $0x50] sm:$0xff] %vm734_vm2, %v2847_v0  ;;  %1337 = vst.msk [vmem:[#allocation3 + $0x60] sm:$0xff] %vm734_vm2, %v2847_v0  ;;  %656 = vrot.lane.b32.xlu1 %v535_v63, %s2848_s26  ;;  %v410_v7 = vsel %vm387_vm0, %v370_v60, -inf  ;;  %v2286_v9 = vld [vmem:[%s2987_s25 + $0x120] ss:$2 sm:$0xff] }
  0x25   : > { %v2313_v4 = vld [vmem:[%s2987_s25 + $0xd1] ss:$2 sm:$0xff]  ;;  %1339 = vst.msk [vmem:[#allocation3 + $0x70] sm:$0xff] %vm734_vm2, %v2847_v0  ;;  %1341 = vst.msk [vmem:[#allocation3 + $0x80] sm:$0xff] %vm734_vm2, %v2847_v0  ;;  %576 = vrot.lane.b32.xlu0 %v515_v1, %s2849_s27  ;;  %v516_v10 = vld [vmem:[#allocation2 + $0x21] sm:$0xff]  ;;  %v411_v11 = vmax.f32 %v409_v3, %v410_v7  ;;  %v406_v12 = vsel %vm387_vm0, %v367_v5, -inf }
  0x26   : > { %1343 = vst.msk [vmem:[#allocation3 + $0x90] sm:$0xff] %vm734_vm2, %v2847_v0  ;;  %1345 = vst.msk [vmem:[#allocation3 + $0xa0] sm:$0xff] %vm734_vm2, %v2847_v0  ;;  %v368_v8 = vmax.f32 %v2281_v61, %v2313_v4  ;;  %v2287_v13 = vld [vmem:[%s2987_s25 + $0x130] ss:$2 sm:$0xff]  ;;  %v2318_v14 = vld [vmem:[%s2987_s25 + $0x121] ss:$2 sm:$0xff] }
  0x27   : > { %1347 = vst.msk [vmem:[#allocation3 + $0xb0] sm:$0xff] %vm734_vm2, %v2847_v0  ;;  %1349 = vst.msk [vmem:[#allocation3 + $0xc0] sm:$0xff] %vm734_vm2, %v2847_v0  ;;  %v2319_v16 = vld [vmem:[%s2987_s25 + $0x131] ss:$2 sm:$0xff]  ;;  %v373_v17 = vmax.f32 %v2286_v9, %v2318_v14  ;;  %v2284_v20 = vld [vmem:[%s2987_s25 + $0x100] ss:$2 sm:$0xff] }
  0x28   : > { %1351 = vst.msk [vmem:[#allocation3 + $0xd0] sm:$0xff] %vm734_vm2, %v2847_v0  ;;  %1353 = vst.msk [vmem:[#allocation3 + $0xe0] sm:$0xff] %vm734_vm2, %v2847_v0  ;;  %v407_v15 = vsel %vm387_vm0, %v368_v8, -inf  ;;  %v374_v19 = vmax.f32 %v2287_v13, %v2319_v16  ;;  %v2285_v21 = vld [vmem:[%s2987_s25 + $0x110] ss:$2 sm:$0xff]  ;;  %658 = vrot.lane.b32.xlu1 %v536_v6, %s2848_s26  ;;  %v518_v23 = vld [vmem:[#allocation2 + $0x41] sm:$0xff] }
  0x29   : > { %1355 = vst.msk [vmem:[#allocation3 + $0xf0] sm:$0xff] %vm734_vm2, %v2847_v0  ;;  %1357 = vst.msk [vmem:[#allocation3 + $0x100] sm:$0xff] %vm734_vm2, %v2847_v0  ;;  %v408_v18 = vmax.f32 %v406_v12, %v407_v15  ;;  %v2316_v22 = vld [vmem:[%s2987_s25 + $0x101] ss:$2 sm:$0xff]  ;;  %578 = vrot.lane.b32.xlu0 %v516_v10, %s2849_s27  ;;  %v415_v24 = vsel %vm387_vm0, %v373_v17, -inf  ;;  %v517_v27 = vld [vmem:[#allocation2 + $0x31] sm:$0xff] }
  0x2a   : > { %1359 = vst.msk [vmem:[#allocation3 + $0x110] sm:$0xff] %vm734_vm2, %v2847_v0  ;;  %1361 = vst.msk [vmem:[#allocation3 + $0x120] sm:$0xff] %vm734_vm2, %v2847_v0  ;;  %v2317_v25 = vld [vmem:[%s2987_s25 + $0x111] ss:$2 sm:$0xff]  ;;  %v371_v26 = vmax.f32 %v2284_v20, %v2316_v22  ;;  %v416_v28 = vsel %vm387_vm0, %v374_v19, -inf  ;;  %v538_v39 = vld [vmem:[#allocation2 + $0x42] sm:$0xff] }
  0x2b   : > { %1363 = vst.msk [vmem:[#allocation3 + $0x130] sm:$0xff] %vm734_vm2, %v2847_v0  ;;  %v372_v29 = vmax.f32 %v2285_v21, %v2317_v25  ;;  %v2290_v30 = vld [vmem:[%s2987_s25 + $0x160] ss:$2 sm:$0xff]  ;;  %v2291_v31 = vld [vmem:[%s2987_s25 + $0x170] ss:$2 sm:$0xff]  ;;  %v417_v32 = vmax.f32 %v415_v24, %v416_v28 }
  0x2c   : > { %482 = vst.msk [vmem:[#allocation2 + $0x51] sm:$0xff] %vm387_vm0, %v402_v2  ;;  %485 = vst.msk [vmem:[#allocation2 + $0x81] sm:$0xff] %vm387_vm0, %v411_v11  ;;  %v412_v33 = vsel %vm387_vm0, %v371_v26, -inf  ;;  %v2322_v34 = vld [vmem:[%s2987_s25 + $0x161] ss:$2 sm:$0xff]  ;;  %582 = vrot.lane.b32.xlu1 %v518_v23, %s2849_s27  ;;  %v537_v43 = vld [vmem:[#allocation2 + $0x32] sm:$0xff] }
  0x2d   : > { %484 = vst.msk [vmem:[#allocation2 + $0x71] sm:$0xff] %vm387_vm0, %v408_v18  ;;  %v413_v35 = vsel %vm387_vm0, %v372_v29, -inf  ;;  %v2323_v36 = vld [vmem:[%s2987_s25 + $0x171] ss:$2 sm:$0xff]  ;;  %v377_v37 = vmax.f32 %v2290_v30, %v2322_v34  ;;  %v2288_v38 = vld [vmem:[%s2987_s25 + $0x140] ss:$2 sm:$0xff]  ;;  %580 = vrot.lane.b32.xlu0 %v517_v27, %s2849_s27 }
  0x2e   : > { %487 = vst.msk [vmem:[#allocation2 + $0xc1] sm:$0xff] %vm387_vm0, %v417_v32  ;;  %v414_v40 = vmax.f32 %v412_v33, %v413_v35  ;;  %v378_v41 = vmax.f32 %v2291_v31, %v2323_v36  ;;  %v2289_v42 = vld [vmem:[%s2987_s25 + $0x150] ss:$2 sm:$0xff]  ;;  %v2320_v45 = vld [vmem:[%s2987_s25 + $0x141] ss:$2 sm:$0xff] }
  0x2f   : > { %v421_v44 = vsel %vm387_vm0, %v377_v37, -inf  ;;  %v2321_v46 = vld [vmem:[%s2987_s25 + $0x151] ss:$2 sm:$0xff]  ;;  %v375_v48 = vmax.f32 %v2288_v38, %v2320_v45  ;;  %v2294_v50 = vld [vmem:[%s2987_s25 + $0x1a0] ss:$2 sm:$0xff] }
  0x30   : > { %486 = vst.msk [vmem:[#allocation2 + $0xb1] sm:$0xff] %vm387_vm0, %v414_v40  ;;  %v422_v47 = vsel %vm387_vm0, %v378_v41, -inf  ;;  %v376_v49 = vmax.f32 %v2289_v42, %v2321_v46  ;;  %v2295_v52 = vld [vmem:[%s2987_s25 + $0x1b0] ss:$2 sm:$0xff]  ;;  %v2326_v53 = vld [vmem:[%s2987_s25 + $0x1a1] ss:$2 sm:$0xff]  ;;  %662 = vrot.lane.b32.xlu1 %v538_v39, %s2848_s26 }
  0x31   : > { %v423_v51 = vmax.f32 %v421_v44, %v422_v47  ;;  %v2327_v54 = vld [vmem:[%s2987_s25 + $0x1b1] ss:$2 sm:$0xff]  ;;  %660 = vrot.lane.b32.xlu0 %v537_v43, %s2848_s26  ;;  %v520_v55 = vld [vmem:[#allocation2 + $0x61] sm:$0xff]  ;;  %v418_v57 = vsel %vm387_vm0, %v375_v48, -inf  ;;  %v381_v59 = vmax.f32 %v2294_v50, %v2326_v53  ;;  %v2293_v63 = vld [vmem:[%s2987_s25 + $0x190] ss:$2 sm:$0xff] }
  0x32   : > { %v419_v58 = vsel %vm387_vm0, %v376_v49, -inf  ;;  %v382_v60 = vmax.f32 %v2295_v52, %v2327_v54  ;;  %v2292_v61 = vld [vmem:[%s2987_s25 + $0x180] ss:$2 sm:$0xff]  ;;  %v2324_v1 = vld [vmem:[%s2987_s25 + $0x181] ss:$2 sm:$0xff]  ;;  %v2332_v11 = vld [vmem:[%s3684_s1 + $0x10] sm:$0xff] }
  0x33   : > { %v519_v56 = vld [vmem:[#allocation2 + $0x51] sm:$0xff]  ;;  %489 = vst.msk [vmem:[#allocation2 + $0xe1] sm:$0xff] %vm387_vm0, %v423_v51  ;;  %v420_v62 = vmax.f32 %v418_v57, %v419_v58  ;;  %v427_v3 = vsel %vm387_vm0, %v381_v59, -inf  ;;  %v379_v5 = vmax.f32 %v2292_v61, %v2324_v1  ;;  %v2298_v7 = vld [vmem:[%s2987_s25 + $0x1e0] ss:$2 sm:$0xff] }
  0x34   : > { %v2325_v2 = vld [vmem:[%s2987_s25 + $0x191] ss:$2 sm:$0xff]  ;;  %v428_v4 = vsel %vm387_vm0, %v382_v60, -inf  ;;  %v2299_v8 = vld [vmem:[%s2987_s25 + $0x1f0] ss:$2 sm:$0xff]  ;;  %586 = vrot.lane.b32.xlu1 %v520_v55, %s2849_s27  ;;  %v540_v17 = vld [vmem:[#allocation2 + $0x62] sm:$0xff] }
  0x35   : > { %v380_v6 = vmax.f32 %v2293_v63, %v2325_v2  ;;  %488 = vst.msk [vmem:[#allocation2 + $0xd1] sm:$0xff] %vm387_vm0, %v420_v62  ;;  %v429_v9 = vmax.f32 %v427_v3, %v428_v4  ;;  %v2330_v10 = vld [vmem:[%s2987_s25 + $0x1e1] ss:$2 sm:$0xff]  ;;  %584 = vrot.lane.b32.xlu0 %v519_v56, %s2849_s27  ;;  %v424_v12 = vsel %vm387_vm0, %v379_v5, -inf  ;;  %v2331_v14 = vld [vmem:[%s2987_s25 + $0x1f1] ss:$2 sm:$0xff] }
  0x36   : > { %v385_v15 = vmax.f32 %v2298_v7, %v2330_v10  ;;  %v2296_v16 = vld [vmem:[%s2987_s25 + $0x1c0] ss:$2 sm:$0xff]  ;;  %v539_v18 = vld [vmem:[#allocation2 + $0x52] sm:$0xff]  ;;  %v386_v20 = vmax.f32 %v2299_v8, %v2331_v14  ;;  %v2328_v23 = vld [vmem:[%s2987_s25 + $0x1c1] ss:$2 sm:$0xff] }
  0x37   : > { %v425_v13 = vsel %vm387_vm0, %v380_v6, -inf  ;;  %491 = vst.msk [vmem:[#allocation2 + $0x101] sm:$0xff] %vm387_vm0, %v429_v9  ;;  %v2297_v21 = vld [vmem:[%s2987_s25 + $0x1d0] ss:$2 sm:$0xff]  ;;  %v2329_v24 = vld [vmem:[%s2987_s25 + $0x1d1] ss:$2 sm:$0xff]  ;;  %v383_v26 = vmax.f32 %v2296_v16, %v2328_v23 }
  0x38   : > { %v426_v19 = vmax.f32 %v424_v12, %v425_v13  ;;  %v433_v22 = vsel %vm387_vm0, %v385_v15, -inf  ;;  %v434_v25 = vsel %vm387_vm0, %v386_v20, -inf  ;;  %v384_v27 = vmax.f32 %v2297_v21, %v2329_v24  ;;  %v2333_v28 = vld [vmem:[%s3684_s1 + $0x18] sm:$0xf]  ;;  %666 = vrot.lane.b32.xlu1 %v540_v17, %s2848_s26  ;;  %v522_v32 = vld [vmem:[#allocation2 + $0x81] sm:$0xff]  ;;  %v495_v3 = vld [vmem:[#allocation2 + $0x10] sm:$0xff] }
  0x39   : > { %664 = vrot.lane.b32.xlu0 %v539_v18, %s2848_s26  ;;  %v435_v30 = vmax.f32 %v433_v22, %v434_v25  ;;  %v2730_v31 = vpack.c.bf16 %v2333_v28, %v2332_v11  ;;  %v521_v33 = vld [vmem:[#allocation2 + $0x71] sm:$0xff]  ;;  %v430_v34 = vsel %vm387_vm0, %v383_v26, -inf  ;;  %v755_v37 = vld [vmem:[%s3684_s1] sm:$0xff]  ;;  %v756_v38 = vld [vmem:[%s3684_s1 + $0x8] sm:$0xf]  ;;  %s2851_s25 = smov 16  }
  0x3a   : > { %490 = vst.msk [vmem:[#allocation2 + $0xf1] sm:$0xff] %vm387_vm0, %v426_v19  ;;  %v431_v35 = vsel %vm387_vm0, %v384_v27, -inf  ;;  %v3176_v39 = vpack.c.bf16 %v756_v38, %v755_v37  ;;  %v542_v40 = vld [vmem:[#allocation2 + $0x82] sm:$0xff]  ;;  %v541_v41 = vld [vmem:[#allocation2 + $0x72] sm:$0xff] }
  0x3b   : > { %493 = vst.msk [vmem:[#allocation2 + $0x121] sm:$0xff] %vm387_vm0, %v435_v30  ;;  %v432_v36 = vmax.f32 %v430_v34, %v431_v35  ;;  %2732 = vmatprep.subr.msk.bf16.mxu0 %vm3154_vm5, %v2730_v31  ;;  %v526_v42 = vld [vmem:[#allocation2 + $0xc1] sm:$0xff]  ;;  %v525_v43 = vld [vmem:[#allocation2 + $0xb1] sm:$0xff] }
  0x3c   : > { %2735 = vmatpush3.bf16.msk.msra.mxu0 %vm3154_vm5, %v2730_v31  ;;  %590 = vrot.lane.b32.xlu1 %v522_v32, %s2849_s27  ;;  %v546_v44 = vld [vmem:[#allocation2 + $0xc2] sm:$0xff]  ;;  %v545_v45 = vld [vmem:[#allocation2 + $0xb2] sm:$0xff]  ;;  %1330 = vst.msk [vmem:[#allocation3 + $0x28] sm:$0x3] %vm1325_vm7, %v2847_v0  ;;  %1326 = vst.msk [vmem:[#allocation3 + $0x8] sm:$0x3] %vm1325_vm7, %v2847_v0 }
  0x3d   : > { %588 = vrot.lane.b32.xlu0 %v521_v33, %s2849_s27  ;;  %492 = vst.msk [vmem:[#allocation2 + $0x111] sm:$0xff] %vm387_vm0, %v432_v36  ;;  %2738 = vmatprep.subr.msk.bf16.mxu0 %vm3154_vm5, %v3176_v39  ;;  %v528_v46 = vld [vmem:[#allocation2 + $0xe1] sm:$0xff]  ;;  %v527_v47 = vld [vmem:[#allocation2 + $0xd1] sm:$0xff] }
  0x3e   : > { %v548_v48 = vld [vmem:[#allocation2 + $0xe2] sm:$0xff]  ;;  %v547_v49 = vld [vmem:[#allocation2 + $0xd2] sm:$0xff]  ;;  %1328 = vst.msk [vmem:[#allocation3 + $0x18] sm:$0x3] %vm1325_vm7, %v2847_v0  ;;  %1332 = vst.msk [vmem:[#allocation3 + $0x38] sm:$0x3] %vm1325_vm7, %v2847_v0 }
  0x3f   : > { %v530_v50 = vld [vmem:[#allocation2 + $0x101] sm:$0xff]  ;;  %v523_v62 = vld [vmem:[#allocation2 + $0x91] sm:$0xff]  ;;  %1334 = vst.msk [vmem:[#allocation3 + $0x48] sm:$0x3] %vm1325_vm7, %v2847_v0  ;;  %1336 = vst.msk [vmem:[#allocation3 + $0x58] sm:$0x3] %vm1325_vm7, %v2847_v0 }
  0x40   : > { %670 = vrot.lane.b32.xlu1 %v542_v40, %s2848_s26  ;;  %v550_v52 = vld [vmem:[#allocation2 + $0x102] sm:$0xff]  ;;  %v543_v63 = vld [vmem:[#allocation2 + $0x92] sm:$0xff]  ;;  %1338 = vst.msk [vmem:[#allocation3 + $0x68] sm:$0x3] %vm1325_vm7, %v2847_v0  ;;  %1340 = vst.msk [vmem:[#allocation3 + $0x78] sm:$0x3] %vm1325_vm7, %v2847_v0 }
  0x41   : > { %668 = vrot.lane.b32.xlu0 %v541_v41, %s2848_s26  ;;  %v529_v51 = vld [vmem:[#allocation2 + $0xf1] sm:$0xff]  ;;  %v514_v58 = vld [vmem:[#allocation2 + $0x1] sm:$0xff]  ;;  %1342 = vst.msk [vmem:[#allocation3 + $0x88] sm:$0x3] %vm1325_vm7, %v2847_v0  ;;  %1344 = vst.msk [vmem:[#allocation3 + $0x98] sm:$0x3] %vm1325_vm7, %v2847_v0 }
  0x42   : > { %v549_v53 = vld [vmem:[#allocation2 + $0xf2] sm:$0xff]  ;;  %v532_v54 = vld [vmem:[#allocation2 + $0x121] sm:$0xff]  ;;  %1346 = vst.msk [vmem:[#allocation3 + $0xa8] sm:$0x3] %vm1325_vm7, %v2847_v0  ;;  %1348 = vst.msk [vmem:[#allocation3 + $0xb8] sm:$0x3] %vm1325_vm7, %v2847_v0 }
  0x43   : > { %v552_v56 = vld [vmem:[#allocation2 + $0x122] sm:$0xff]  ;;  %v533_v1 = vld [vmem:[#allocation2 + $0x131] sm:$0xff]  ;;  %1350 = vst.msk [vmem:[#allocation3 + $0xc8] sm:$0x3] %vm1325_vm7, %v2847_v0  ;;  %1352 = vst.msk [vmem:[#allocation3 + $0xd8] sm:$0x3] %vm1325_vm7, %v2847_v0 }
  0x44   : > { %598 = vrot.lane.b32.xlu1 %v526_v42, %s2849_s27  ;;  %v531_v55 = vld [vmem:[#allocation2 + $0x111] sm:$0xff]  ;;  %v534_v59 = vld [vmem:[#allocation2 + $0x2] sm:$0xff]  ;;  %1354 = vst.msk [vmem:[#allocation3 + $0xe8] sm:$0x3] %vm1325_vm7, %v2847_v0  ;;  %1356 = vst.msk [vmem:[#allocation3 + $0xf8] sm:$0x3] %vm1325_vm7, %v2847_v0 }
  0x45   : > { %596 = vrot.lane.b32.xlu0 %v525_v43, %s2849_s27  ;;  %v551_v57 = vld [vmem:[#allocation2 + $0x112] sm:$0xff]  ;;  %v524_v60 = vld [vmem:[#allocation2 + $0xa1] sm:$0xff]  ;;  %1358 = vst.msk [vmem:[#allocation3 + $0x108] sm:$0x3] %vm1325_vm7, %v2847_v0  ;;  %1360 = vst.msk [vmem:[#allocation3 + $0x118] sm:$0x3] %vm1325_vm7, %v2847_v0 }
  0x46   : > { %v544_v61 = vld [vmem:[#allocation2 + $0xa2] sm:$0xff]  ;;  %v553_v2 = vld [vmem:[#allocation2 + $0x132] sm:$0xff]  ;;  %1362 = vst.msk [vmem:[#allocation3 + $0x128] sm:$0x3] %vm1325_vm7, %v2847_v0  ;;  %1364 = vst.msk [vmem:[#allocation3 + $0x138] sm:$0x3] %vm1325_vm7, %v2847_v0 }
  0x47   : > { %v496_v8 = vld [vmem:[#allocation2 + $0x20] sm:$0xff]  ;;  %v2369_v10 = vld [vmem:[%s3684_s1 + $0x28] sm:$0xf]  ;;  %v497_v19 = vld [vmem:[#allocation2 + $0x30] sm:$0xff] }
  0x48   : > { %678 = vrot.lane.b32.xlu1 %v546_v44, %s2848_s26  ;;  %v2368_v9 = vld [vmem:[%s3684_s1 + $0x20] sm:$0xff]  ;;  %v499_v30 = vld [vmem:[#allocation2 + $0x50] sm:$0xff] }
  0x49   : > { %676 = vrot.lane.b32.xlu0 %v545_v45, %s2848_s26  ;;  %v3220_v14 = vpack.c.bf16 %v2369_v10, %v2368_v9  ;;  %v498_v18 = vld [vmem:[#allocation2 + $0x40] sm:$0xff]  ;;  %v501_v40 = vld [vmem:[#allocation2 + $0x70] sm:$0xff] }
  0x4a   : > { %v500_v28 = vld [vmem:[#allocation2 + $0x60] sm:$0xff] }
  0x4c   : > { %602 = vrot.lane.b32.xlu1 %v528_v46, %s2849_s27 }
  0x4d   : > { %600 = vrot.lane.b32.xlu0 %v527_v47, %s2849_s27 }
  0x50   : > { %682 = vrot.lane.b32.xlu1 %v548_v48, %s2848_s26 }
  0x51   : > { %680 = vrot.lane.b32.xlu0 %v547_v49, %s2848_s26  ;;  %v506_v49 = vld [vmem:[#allocation2 + $0xc0] sm:$0xff] }
  0x54   : > { %606 = vrot.lane.b32.xlu1 %v530_v50, %s2849_s27  ;;  %v505_v50 = vld [vmem:[#allocation2 + $0xb0] sm:$0xff] }
  0x55   : > { %604 = vrot.lane.b32.xlu0 %v529_v51, %s2849_s27 }
  0x58   : > { %686 = vrot.lane.b32.xlu1 %v550_v52, %s2848_s26 }
  0x59   : > { %684 = vrot.lane.b32.xlu0 %v549_v53, %s2848_s26 }
  0x5c   : > { %610 = vrot.lane.b32.xlu1 %v532_v54, %s2849_s27 }
  0x5d   : > { %608 = vrot.lane.b32.xlu0 %v531_v55, %s2849_s27 }
  0x60   : > { %690 = vrot.lane.b32.xlu1 %v552_v56, %s2848_s26 }
  0x61   : > { %688 = vrot.lane.b32.xlu0 %v551_v57, %s2848_s26 }
  0x64   : > { %654 = vrot.lane.b32.xlu1 %v534_v59, %s2848_s26  ;;  %v508_v59 = vld [vmem:[#allocation2 + $0xe0] sm:$0xff] }
  0x65   : > { %574 = vrot.lane.b32.xlu0 %v514_v58, %s2849_s27 }
  0x68   : > { %674 = vrot.lane.b32.xlu1 %v544_v61, %s2848_s26 }
  0x69   : > { %594 = vrot.lane.b32.xlu0 %v524_v60, %s2849_s27  ;;  %v507_v60 = vld [vmem:[#allocation2 + $0xd0] sm:$0xff] }
  0x6c   : > { %672 = vrot.lane.b32.xlu1 %v543_v63, %s2848_s26 }
  0x6d   : > { %592 = vrot.lane.b32.xlu0 %v523_v62, %s2849_s27 }
  0x70   : > { %692 = vrot.lane.b32.xlu1 %v553_v2, %s2848_s26 }
  0x71   : > { %612 = vrot.lane.b32.xlu0 %v533_v1, %s2849_s27 }
  0x96   : > { %v657_v4 = vpop.permute.xlu1 %656 }
  0x97   : > { %v577_v5 = vpop.permute.xlu0 %576 }
  0x98   : > { %v715_v6 = vsel %vm387_vm0, %v495_v3, %v577_v5 }
  0x99   : > { %v3209_v7 = vsel %vm734_vm2, %v715_v6, %v657_v4  ;;  %v510_v6 = vld [vmem:[#allocation2 + $0x100] sm:$0xff] }
  0x9a   : > { %2560 = vmatprep.mubr.msk.f32.mxu0 %vm760_vm6, %v3209_v7  ;;  %v659_v11 = vpop.permute.xlu1 %658 }
  0x9b   : > { %v579_v12 = vpop.permute.xlu0 %578 }
  0x9c   : > { %v716_v13 = vsel %vm387_vm0, %v496_v8, %v579_v12  ;;  %v509_v8 = vld [vmem:[#allocation2 + $0xf0] sm:$0xff] }
  0x9d   : > { %v3223_v15 = vsel %vm734_vm2, %v716_v13, %v659_v11 }
  0x9e   : > { %2561 = vmatmul.mubr.msk.f32.vlgmr.msra.gmra.mrb[0].mxu0 %vm760_vm6, %v3223_v15  ;;  %v583_v16 = vpop.permute.xlu1 %582 }
  0x9f   : > { %v581_v17 = vpop.permute.xlu0 %580  ;;  %2741 = vmatpush3.bf16.msk.msra.mxu0 %vm3154_vm5, %v3176_v39  ;;  %v718_v20 = vsel %vm387_vm0, %v498_v18, %v583_v16  ;;  %v502_v39 = vld [vmem:[#allocation2 + $0x80] sm:$0xff] }
  0xa0   : > { %2744 = vmatprep.subr.msk.bf16.mxu0 %vm3154_vm5, %v3220_v14  ;;  %v717_v21 = vsel %vm387_vm0, %v497_v19, %v581_v17  ;;  %v512_v19 = vld [vmem:[#allocation2 + $0x120] sm:$0xff] }
  0xa2   : > { %v663_v22 = vpop.permute.xlu1 %662 }
  0xa3   : > { %v661_v23 = vpop.permute.xlu0 %660  ;;  %v3236_v24 = vsel %vm734_vm2, %v718_v20, %v663_v22  ;;  %v511_v20 = vld [vmem:[#allocation2 + $0x110] sm:$0xff] }
  0xa4   : > { %v3239_v25 = vsel %vm734_vm2, %v717_v21, %v661_v23 }
  0xa5   : > { %2563 = vmatprep.mubr.msk.f32.mxu0 %vm760_vm6, %v3239_v25 }
  0xa6   : > { %2564 = vmatmul.mubr.msk.f32.gmra.mrb[2].mxu0 %vm760_vm6, %v3236_v24  ;;  %v587_v26 = vpop.permute.xlu1 %586 }
  0xa7   : > { %v585_v27 = vpop.permute.xlu0 %584  ;;  %v720_v31 = vsel %vm387_vm0, %v500_v28, %v587_v26 }
  0xa8   : > { %v719_v32 = vsel %vm387_vm0, %v499_v30, %v585_v27  ;;  %v494_v30 = vld [vmem:[#allocation2] sm:$0xff] }
  0xaa   : > { %v667_v33 = vpop.permute.xlu1 %666 }
  0xab   : > { %v665_v34 = vpop.permute.xlu0 %664  ;;  %v3248_v35 = vsel %vm734_vm2, %v720_v31, %v667_v33 }
  0xac   : > { %v3251_v36 = vsel %vm734_vm2, %v719_v32, %v665_v34 }
  0xad   : > { %2566 = vmatprep.mubr.msk.f32.mxu0 %vm760_vm6, %v3251_v36 }
  0xae   : > { %2567 = vmatmul.mubr.msk.f32.gmra.mrb[4].mxu0 %vm760_vm6, %v3248_v35  ;;  %v591_v37 = vpop.permute.xlu1 %590 }
  0xaf   : > { %v589_v38 = vpop.permute.xlu0 %588  ;;  %v722_v41 = vsel %vm387_vm0, %v502_v39, %v591_v37  ;;  %v504_v37 = vld [vmem:[#allocation2 + $0xa0] sm:$0xff] }
  0xb0   : > { %v721_v42 = vsel %vm387_vm0, %v501_v40, %v589_v38 }
  0xb2   : > { %v671_v43 = vpop.permute.xlu1 %670 }
  0xb3   : > { %v669_v44 = vpop.permute.xlu0 %668  ;;  %v3260_v45 = vsel %vm734_vm2, %v722_v41, %v671_v43 }
  0xb4   : > { %v3263_v46 = vsel %vm734_vm2, %v721_v42, %v669_v44  ;;  %v3408_v44 = vld [vmem:[%s3685_s2] ss:$0 sm:$0xff] }
  0xb5   : > { %2569 = vmatprep.mubr.msk.f32.mxu0 %vm760_vm6, %v3263_v46 }
  0xb6   : > { %2570 = vmatmul.mubr.msk.f32.gmra.mrb[6].mxu0 %vm760_vm6, %v3260_v45  ;;  %v599_v47 = vpop.permute.xlu1 %598 }
  0xb7   : > { %v597_v48 = vpop.permute.xlu0 %596  ;;  %v726_v51 = vsel %vm387_vm0, %v506_v49, %v599_v47 }
  0xb8   : > { %v725_v52 = vsel %vm387_vm0, %v505_v50, %v597_v48 }
  0xba   : > { %v679_v53 = vpop.permute.xlu1 %678 }
  0xbb   : > { %v677_v54 = vpop.permute.xlu0 %676  ;;  %v3272_v55 = vsel %vm734_vm2, %v726_v51, %v679_v53 }
  0xbc   : > { %v746_v56 = vsel %vm734_vm2, %v725_v52, %v677_v54  ;;  %v2390_v54 = vld [vmem:[%s3686_s3 + $0x28] sm:$0xff] }
  0xbd   : > { %2572 = vmatprep.mubr.msk.f32.mxu0 %vm760_vm6, %v746_v56 }
  0xbe   : > { %2573 = vmatmul.mubr.msk.f32.gmra.mrb[8].mxu0 %vm760_vm6, %v3272_v55  ;;  %v603_v57 = vpop.permute.xlu1 %602 }
  0xbf   : > { %v601_v58 = vpop.permute.xlu0 %600  ;;  %v728_v61 = vsel %vm387_vm0, %v508_v59, %v603_v57 }
  0xc0   : > { %v727_v62 = vsel %vm387_vm0, %v507_v60, %v601_v58 }
  0xc2   : > { %v683_v63 = vpop.permute.xlu1 %682 }
  0xc3   : > { %v681_v1 = vpop.permute.xlu0 %680  ;;  %v3281_v2 = vsel %vm734_vm2, %v728_v61, %v683_v63 }
  0xc4   : > { %v3284_v3 = vsel %vm734_vm2, %v727_v62, %v681_v1 }
  0xc5   : > { %2575 = vmatprep.mubr.msk.f32.mxu0 %vm760_vm6, %v3284_v3 }
  0xc6   : > { %2576 = vmatmul.mubr.msk.f32.gmra.mrb[10].mxu0 %vm760_vm6, %v3281_v2  ;;  %v607_v4 = vpop.permute.xlu1 %606 }
  0xc7   : > { %v605_v5 = vpop.permute.xlu0 %604  ;;  %v730_v9 = vsel %vm387_vm0, %v510_v6, %v607_v4 }
  0xc8   : > { %v729_v10 = vsel %vm387_vm0, %v509_v8, %v605_v5 }
  0xca   : > { %v687_v11 = vpop.permute.xlu1 %686 }
  0xcb   : > { %v685_v12 = vpop.permute.xlu0 %684  ;;  %v751_v13 = vsel %vm734_vm2, %v730_v9, %v687_v11 }
  0xcc   : > { %v750_v16 = vsel %vm734_vm2, %v729_v10, %v685_v12 }
  0xcd   : > { %2578 = vmatprep.mubr.msk.f32.mxu0 %vm760_vm6, %v750_v16 }
  0xce   : > { %2579 = vmatmul.mubr.msk.f32.gmra.mrb[12].mxu0 %vm760_vm6, %v751_v13  ;;  %v611_v17 = vpop.permute.xlu1 %610 }
  0xcf   : > { %v609_v18 = vpop.permute.xlu0 %608  ;;  %v732_v21 = vsel %vm387_vm0, %v512_v19, %v611_v17 }
  0xd0   : > { %v731_v22 = vsel %vm387_vm0, %v511_v20, %v609_v18 }
  0xd2   : > { %v691_v23 = vpop.permute.xlu1 %690 }
  0xd3   : > { %v689_v26 = vpop.permute.xlu0 %688  ;;  %v753_v27 = vsel %vm734_vm2, %v732_v21, %v691_v23 }
  0xd4   : > { %v752_v28 = vsel %vm734_vm2, %v731_v22, %v689_v26 }
  0xd5   : > { %2581 = vmatprep.mubr.msk.f32.mxu0 %vm760_vm6, %v752_v28 }
  0xd6   : > { %2582 = vmatmul.mubr.msk.f32.gmra.mrb[14].mxu0 %vm760_vm6, %v753_v27  ;;  %v655_v32 = vpop.permute.xlu1 %654 }
  0xd7   : > { %v575_v31 = vpop.permute.xlu0 %574 }
  0xd8   : > { %v714_v33 = vsel %vm387_vm0, %v494_v30, %v575_v31 }
  0xd9   : > { %v735_v34 = vsel %vm734_vm2, %v714_v33, %v655_v32 }
  0xda   : > { %2588 = vmatprep.mubr.msk.f32.mxu0 %vm760_vm6, %v735_v34  ;;  %v675_v40 = vpop.permute.xlu1 %674 }
  0xdb   : > { %2589 = vmatmul.mubr.msk.f32.vlgmr.msra.gmra.mrb[0].mxu0 %vm760_vm6, %v3209_v7  ;;  %v595_v38 = vpop.permute.xlu0 %594  ;;  %v503_v7 = vld [vmem:[#allocation2 + $0x90] sm:$0xff] }
  0xdc   : > { %2747 = vmatpush3.bf16.msk.msra.mxu0 %vm3154_vm5, %v3220_v14  ;;  %2591 = vmatprep.mubr.msk.f32.mxu0 %vm760_vm6, %v3223_v15  ;;  %v724_v39 = vsel %vm387_vm0, %v504_v37, %v595_v38 }
  0xdd   : > { %v745_v29 = vsel %vm734_vm2, %v724_v39, %v675_v40 }
  0xde   : > { %v673_v42 = vpop.permute.xlu1 %672 }
  0xdf   : > { %2592 = vmatmul.mubr.msk.f32.gmra.mrb[2].mxu0 %vm760_vm6, %v3239_v25  ;;  %v593_v14 = vpop.permute.xlu0 %592 }
  0xe0   : > { %2594 = vmatprep.mubr.msk.f32.mxu0 %vm760_vm6, %v3236_v24  ;;  %v723_v41 = vsel %vm387_vm0, %v503_v7, %v593_v14 }
  0xe3   : > { %2595 = vmatmul.mubr.msk.f32.gmra.mrb[4].mxu0 %vm760_vm6, %v3251_v36 }
  0xe4   : > { %2597 = vmatprep.mubr.msk.f32.mxu0 %vm760_vm6, %v3248_v35 }
  0xe7   : > { %2598 = vmatmul.mubr.msk.f32.gmra.mrb[6].mxu0 %vm760_vm6, %v3263_v46 }
  0xe8   : > { %2600 = vmatprep.mubr.msk.f32.mxu0 %vm760_vm6, %v745_v29 }
  0xeb   : > { %2601 = vmatmul.mubr.msk.f32.gmra.mrb[8].mxu0 %vm760_vm6, %v746_v56 }
  0xec   : > { %2603 = vmatprep.mubr.msk.f32.mxu0 %vm760_vm6, %v3272_v55 }
  0xef   : > { %2604 = vmatmul.mubr.msk.f32.gmra.mrb[10].mxu0 %vm760_vm6, %v3284_v3 }
  0xf0   : > { %2606 = vmatprep.mubr.msk.f32.mxu0 %vm760_vm6, %v3281_v2 }
  0xf3   : > { %2607 = vmatmul.mubr.msk.f32.gmra.mrb[12].mxu0 %vm760_vm6, %v750_v16 }
  0xf4   : > { %2609 = vmatprep.mubr.msk.f32.mxu0 %vm760_vm6, %v751_v13 }
  0xf7   : > { %2610 = vmatmul.mubr.msk.f32.gmra.mrb[14].mxu0 %vm760_vm6, %v752_v28 }
  0xf8   : > { %2616 = vmatprep.mubr.msk.f32.mxu0 %vm760_vm6, %v3223_v15  ;;  %v744_v15 = vsel %vm734_vm2, %v723_v41, %v673_v42 }
  0xfb   : > { %2617 = vmatmul.mubr.msk.f32.vlgmr.msra.gmra.mrb[0].mxu0 %vm760_vm6, %v3239_v25  ;;  %v613_v25 = vpop.permute.xlu0 %612 }
  0xfc   : > { %2619 = vmatprep.mubr.msk.f32.mxu0 %vm760_vm6, %v3236_v24  ;;  %v513_v24 = vld [vmem:[#allocation2 + $0x130] sm:$0xff] }
  0xff   : > { %2620 = vmatmul.mubr.msk.f32.gmra.mrb[2].mxu0 %vm760_vm6, %v3251_v36  ;;  %v693_v36 = vpop.permute.xlu1 %692 }
 0x100   : > { %2622 = vmatprep.mubr.msk.f32.mxu0 %vm760_vm6, %v3248_v35  ;;  %v733_v35 = vsel %vm387_vm0, %v513_v24, %v613_v25 }
 0x101   : > { %v754_v43 = vsel %vm734_vm2, %v733_v35, %v693_v36 }
 0x103   : > { %2623 = vmatmul.mubr.msk.f32.gmra.mrb[4].mxu0 %vm760_vm6, %v3263_v46  ;;  %v2389_v46 = vld [vmem:[%s3686_s3 + $0x20] sm:$0xff] }
 0x104   : > { %2625 = vmatprep.mubr.msk.f32.mxu0 %vm760_vm6, %v3260_v45  ;;  %v2388_v45 = vld [vmem:[%s3686_s3 + $0x18] sm:$0xff] }
 0x105   : > { %v2748_v47 = vpack.c.bf16 %v2389_v46, %v2388_v45  ;;  %v1643_v46 = vld [vmem:[%s3686_s3] sm:$0xff] }
 0x107   : > { %2626 = vmatmul.mubr.msk.f32.gmra.mrb[6].mxu0 %vm760_vm6, %v744_v15  ;;  %2749 = vmatprep.subr.bf16.mxu1 %v2748_v47 }
 0x108   : > { %2628 = vmatprep.mubr.msk.f32.mxu0 %vm760_vm6, %v3272_v55  ;;  %2751 = vmatpush3.bf16.msra.mxu1 %v2748_v47 }
 0x109   : > { %2644 = vmatprep.subr.mxu1 %v2390_v54 }
 0x10b   : > { %2629 = vmatmul.mubr.msk.f32.gmra.mrb[8].mxu0 %vm760_vm6, %v3284_v3 }
 0x10c   : > { %2631 = vmatprep.mubr.msk.f32.mxu0 %vm760_vm6, %v3281_v2  ;;  %2645 = vmatpush3.msra.mxu1 %v2390_v54 }
 0x10f   : > { %2632 = vmatmul.mubr.msk.f32.gmra.mrb[10].mxu0 %vm760_vm6, %v750_v16 }
 0x110   : > { %2634 = vmatprep.mubr.msk.f32.mxu0 %vm760_vm6, %v751_v13 }
 0x113   : > { %2635 = vmatmul.mubr.msk.f32.gmra.mrb[12].mxu0 %vm760_vm6, %v752_v28 }
 0x114   : > { %2637 = vmatprep.mubr.msk.f32.mxu0 %vm760_vm6, %v753_v27 }
 0x117   : > { %2638 = vmatmul.mubr.msk.f32.gmra.mrb[14].mxu0 %vm760_vm6, %v754_v43 }
 0x1ce   : > { %v2618_v48 = vpop.f32.mrb[0].mxu0 }
 0x1cf   : > { %v1293_v49 = vadd.f32 %v2618_v48, %v3408_v44  ;;  %v1190_v50 = vpop.f32.mrb[1].mxu0 }
 0x1d0   : > { %v1292_v0 = vadd.f32 %v3408_v44, %v1190_v50 }
 0x1d1   : > { %v1309_v51 = vmax.f32 %v1293_v49, 0.0 }
 0x1d2   : > { %v1308_v52 = vmax.f32 %v1292_v0, 0.0  ;;  %v2621_v53 = vpop.f32.mrb[2].mxu0 }
 0x1d3   : > { %1367 = vst.msk [vmem:[#allocation3 + $0x21] sm:$0xff] %vm734_vm2, %v1309_v51  ;;  %v1295_v55 = vadd.f32 %v2621_v53, %v3408_v44  ;;  %v1200_v56 = vpop.f32.mrb[3].mxu0 }
 0x1d4   : > { %1366 = vst.msk [vmem:[#allocation3 + $0x11] sm:$0xff] %vm734_vm2, %v1308_v52  ;;  %v1294_v57 = vadd.f32 %v3408_v44, %v1200_v56 }
 0x1d5   : > { %v1311_v58 = vmax.f32 %v1295_v55, 0.0 }
 0x1d6   : > { %v1310_v59 = vmax.f32 %v1294_v57, 0.0  ;;  %v2624_v60 = vpop.f32.mrb[4].mxu0 }
 0x1d7   : > { %1369 = vst.msk [vmem:[#allocation3 + $0x41] sm:$0xff] %vm734_vm2, %v1311_v58  ;;  %v1297_v61 = vadd.f32 %v2624_v60, %v3408_v44  ;;  %v1210_v62 = vpop.f32.mrb[5].mxu0 }
 0x1d8   : > { %1368 = vst.msk [vmem:[#allocation3 + $0x31] sm:$0xff] %vm734_vm2, %v1310_v59  ;;  %v1296_v63 = vadd.f32 %v3408_v44, %v1210_v62 }
 0x1d9   : > { %v1313_v1 = vmax.f32 %v1297_v61, 0.0 }
 0x1da   : > { %v1312_v2 = vmax.f32 %v1296_v63, 0.0  ;;  %v2627_v3 = vpop.f32.mrb[6].mxu0  ;;  %v1404_v4 = vld [vmem:[#allocation3 + $0x21] sm:$0xff] }
 0x1db   : > { %1371 = vst.msk [vmem:[#allocation3 + $0x61] sm:$0xff] %vm734_vm2, %v1313_v1  ;;  %v1299_v5 = vadd.f32 %v2627_v3, %v3408_v44  ;;  %1466 = vrot.lane.b32.xlu1 %v1404_v4, %s2848_s26  ;;  %v1220_v6 = vpop.f32.mrb[7].mxu0  ;;  %v1403_v8 = vld [vmem:[#allocation3 + $0x11] sm:$0xff]  ;;  %v1424_v13 = vld [vmem:[#allocation3 + $0x22] sm:$0xff] }
 0x1dc   : > { %1370 = vst.msk [vmem:[#allocation3 + $0x51] sm:$0xff] %vm734_vm2, %v1312_v2  ;;  %v1298_v9 = vadd.f32 %v3408_v44, %v1220_v6  ;;  %1464 = vrot.lane.b32.xlu0 %v1403_v8, %s2848_s26  ;;  %v1423_v18 = vld [vmem:[#allocation3 + $0x12] sm:$0xff]  ;;  %v1422_v4 = vld [vmem:[#allocation3 + $0x2] sm:$0xff] }
 0x1dd   : > { %v1315_v10 = vmax.f32 %v1299_v5, 0.0  ;;  %v1402_v5 = vld [vmem:[#allocation3 + $0x1] sm:$0xff] }
 0x1de   : > { %v1314_v11 = vmax.f32 %v1298_v9, 0.0  ;;  %v2630_v12 = vpop.f32.mrb[8].mxu0  ;;  %v1406_v23 = vld [vmem:[#allocation3 + $0x41] sm:$0xff]  ;;  %v1431_v9 = vld [vmem:[#allocation3 + $0x92] sm:$0xff] }
 0x1df   : > { %1373 = vst.msk [vmem:[#allocation3 + $0x81] sm:$0xff] %vm734_vm2, %v1315_v10  ;;  %v1301_v16 = vadd.f32 %v2630_v12, %v3408_v44  ;;  %1546 = vrot.lane.b32.xlu1 %v1424_v13, %s2851_s25  ;;  %v1230_v17 = vpop.f32.mrb[9].mxu0  ;;  %v1405_v28 = vld [vmem:[#allocation3 + $0x31] sm:$0xff]  ;;  %v1426_v34 = vld [vmem:[#allocation3 + $0x42] sm:$0xff] }
 0x1e0   : > { %1372 = vst.msk [vmem:[#allocation3 + $0x71] sm:$0xff] %vm734_vm2, %v1314_v11  ;;  %v1300_v19 = vadd.f32 %v3408_v44, %v1230_v17  ;;  %1544 = vrot.lane.b32.xlu0 %v1423_v18, %s2851_s25  ;;  %v1425_v39 = vld [vmem:[#allocation3 + $0x32] sm:$0xff]  ;;  %v1432_v6 = vld [vmem:[#allocation3 + $0xa2] sm:$0xff] }
 0x1e1   : > { %v1317_v20 = vmax.f32 %v1301_v16, 0.0  ;;  %v1412_v8 = vld [vmem:[#allocation3 + $0xa1] sm:$0xff]  ;;  %v1411_v10 = vld [vmem:[#allocation3 + $0x91] sm:$0xff] }
 0x1e2   : > { %v1316_v21 = vmax.f32 %v1300_v19, 0.0  ;;  %v2633_v22 = vpop.f32.mrb[10].mxu0  ;;  %v1408_v41 = vld [vmem:[#allocation3 + $0x61] sm:$0xff]  ;;  %v1441_v11 = vld [vmem:[#allocation3 + $0x132] sm:$0xff] }
 0x1e3   : > { %1375 = vst.msk [vmem:[#allocation3 + $0xc1] sm:$0xff] %vm734_vm2, %v1317_v20  ;;  %v1303_v26 = vadd.f32 %v2633_v22, %v3408_v44  ;;  %1470 = vrot.lane.b32.xlu1 %v1406_v23, %s2848_s26  ;;  %v1240_v27 = vpop.f32.mrb[11].mxu0  ;;  %v1407_v24 = vld [vmem:[#allocation3 + $0x51] sm:$0xff]  ;;  %v1428_v43 = vld [vmem:[#allocation3 + $0x62] sm:$0xff] }
 0x1e4   : > { %1374 = vst.msk [vmem:[#allocation3 + $0xb1] sm:$0xff] %vm734_vm2, %v1316_v21  ;;  %v1302_v30 = vadd.f32 %v3408_v44, %v1240_v27  ;;  %1468 = vrot.lane.b32.xlu0 %v1405_v28, %s2848_s26  ;;  %v1427_v45 = vld [vmem:[#allocation3 + $0x52] sm:$0xff]  ;;  %v1384_v19 = vld [vmem:[#allocation3 + $0x20] sm:$0xff] }
 0x1e5   : > { %v1319_v31 = vmax.f32 %v1303_v26, 0.0  ;;  %v1421_v12 = vld [vmem:[#allocation3 + $0x131] sm:$0xff] }
 0x1e6   : > { %v1318_v32 = vmax.f32 %v1302_v30, 0.0  ;;  %v2636_v33 = vpop.f32.mrb[12].mxu0  ;;  %v1410_v48 = vld [vmem:[#allocation3 + $0x81] sm:$0xff]  ;;  %v1383_v17 = vld [vmem:[#allocation3 + $0x10] sm:$0xff]  ;;  %v2424_v30 = vld [vmem:[%s3686_s3 + $0x38] sm:$0xff] }
 0x1e7   : > { %1377 = vst.msk [vmem:[#allocation3 + $0xe1] sm:$0xff] %vm734_vm2, %v1319_v31  ;;  %v1305_v37 = vadd.f32 %v2636_v33, %v3408_v44  ;;  %1550 = vrot.lane.b32.xlu1 %v1426_v34, %s2851_s25  ;;  %v1250_v38 = vpop.f32.mrb[13].mxu0  ;;  %v1409_v49 = vld [vmem:[#allocation3 + $0x71] sm:$0xff]  ;;  %v1430_v50 = vld [vmem:[#allocation3 + $0x82] sm:$0xff] }
 0x1e8   : > { %1376 = vst.msk [vmem:[#allocation3 + $0xd1] sm:$0xff] %vm734_vm2, %v1318_v32  ;;  %v1304_v40 = vadd.f32 %v3408_v44, %v1250_v38  ;;  %1548 = vrot.lane.b32.xlu0 %v1425_v39, %s2851_s25  ;;  %v1429_v0 = vld [vmem:[#allocation3 + $0x72] sm:$0xff]  ;;  %v1386_v38 = vld [vmem:[#allocation3 + $0x40] sm:$0xff] }
 0x1e9   : > { %v1321_v29 = vmax.f32 %v1305_v37, 0.0  ;;  %v1645_v27 = vld [vmem:[%s3686_s3 + $0x10] sm:$0xff] }
 0x1ea   : > { %v1320_v7 = vmax.f32 %v1304_v40, 0.0  ;;  %v2639_v14 = vpop.f32.mrb[14].mxu0  ;;  %v1414_v51 = vld [vmem:[#allocation3 + $0xc1] sm:$0xff]  ;;  %v2423_v28 = vld [vmem:[%s3686_s3 + $0x30] sm:$0xff] }
 0x1eb   : > { %1379 = vst.msk [vmem:[#allocation3 + $0x101] sm:$0xff] %vm734_vm2, %v1321_v29  ;;  %v1307_v42 = vadd.f32 %v2639_v14, %v3408_v44  ;;  %1474 = vrot.lane.b32.xlu1 %v1408_v41, %s2848_s26  ;;  %v1260_v15 = vpop.f32.mrb[15].mxu0  ;;  %v1413_v52 = vld [vmem:[#allocation3 + $0xb1] sm:$0xff]  ;;  %v1434_v53 = vld [vmem:[#allocation3 + $0xc2] sm:$0xff]  ;;  %v3522_v33 = vpack.c.bf16 %v2424_v30, %v2423_v28 }
 0x1ec   : > { %1378 = vst.msk [vmem:[#allocation3 + $0xf1] sm:$0xff] %vm734_vm2, %v1320_v7  ;;  %v1306_v25 = vadd.f32 %v3408_v44, %v1260_v15  ;;  %1472 = vrot.lane.b32.xlu0 %v1407_v24, %s2848_s26  ;;  %v1644_v44 = vld [vmem:[%s3686_s3 + $0x8] sm:$0xff]  ;;  %v1433_v54 = vld [vmem:[#allocation3 + $0xb2] sm:$0xff] }
 0x1ed   : > { %v1323_v35 = vmax.f32 %v1307_v42, 0.0  ;;  %v3469_v47 = vpack.c.bf16 %v1644_v44, %v1643_v46  ;;  %v1385_v34 = vld [vmem:[#allocation3 + $0x30] sm:$0xff] }
 0x1ee   : > { %v1322_v36 = vmax.f32 %v1306_v25, 0.0  ;;  %v1416_v55 = vld [vmem:[#allocation3 + $0xe1] sm:$0xff]  ;;  %v1387_v15 = vld [vmem:[#allocation3 + $0x50] sm:$0xff] }
 0x1ef   : > { %1381 = vst.msk [vmem:[#allocation3 + $0x121] sm:$0xff] %vm734_vm2, %v1323_v35  ;;  %1554 = vrot.lane.b32.xlu1 %v1428_v43, %s2851_s25  ;;  %2753 = vmatprep.subr.bf16.mxu1 %v3469_v47  ;;  %v1415_v56 = vld [vmem:[#allocation3 + $0xd1] sm:$0xff]  ;;  %v1436_v57 = vld [vmem:[#allocation3 + $0xe2] sm:$0xff] }
 0x1f0   : > { %1380 = vst.msk [vmem:[#allocation3 + $0x111] sm:$0xff] %vm734_vm2, %v1322_v36  ;;  %1552 = vrot.lane.b32.xlu0 %v1427_v45, %s2851_s25  ;;  %v1435_v58 = vld [vmem:[#allocation3 + $0xd2] sm:$0xff]  ;;  %v1388_v25 = vld [vmem:[#allocation3 + $0x60] sm:$0xff] }
 0x1f2   : > { %v1418_v59 = vld [vmem:[#allocation3 + $0x101] sm:$0xff] }
 0x1f3   : > { %1478 = vrot.lane.b32.xlu1 %v1410_v48, %s2848_s26  ;;  %v1417_v60 = vld [vmem:[#allocation3 + $0xf1] sm:$0xff]  ;;  %v1438_v61 = vld [vmem:[#allocation3 + $0x102] sm:$0xff] }
 0x1f4   : > { %1476 = vrot.lane.b32.xlu0 %v1409_v49, %s2848_s26  ;;  %v1437_v62 = vld [vmem:[#allocation3 + $0xf2] sm:$0xff] }
 0x1f5   : > { %v1389_v48 = vld [vmem:[#allocation3 + $0x70] sm:$0xff] }
 0x1f6   : > { %v1420_v63 = vld [vmem:[#allocation3 + $0x121] sm:$0xff] }
 0x1f7   : > { %1558 = vrot.lane.b32.xlu1 %v1430_v50, %s2851_s25  ;;  %v1419_v1 = vld [vmem:[#allocation3 + $0x111] sm:$0xff]  ;;  %v1440_v2 = vld [vmem:[#allocation3 + $0x122] sm:$0xff] }
 0x1f8   : > { %1556 = vrot.lane.b32.xlu0 %v1429_v0, %s2851_s25  ;;  %v1439_v3 = vld [vmem:[#allocation3 + $0x112] sm:$0xff]  ;;  %v1390_v50 = vld [vmem:[#allocation3 + $0x80] sm:$0xff] }
 0x1fb   : > { %1486 = vrot.lane.b32.xlu1 %v1414_v51, %s2848_s26 }
 0x1fc   : > { %1484 = vrot.lane.b32.xlu0 %v1413_v52, %s2848_s26 }
 0x1ff   : > { %1566 = vrot.lane.b32.xlu1 %v1434_v53, %s2851_s25 }
 0x200   : > { %1564 = vrot.lane.b32.xlu0 %v1433_v54, %s2851_s25 }
 0x203   : > { %1490 = vrot.lane.b32.xlu1 %v1416_v55, %s2848_s26 }
 0x204   : > { %1488 = vrot.lane.b32.xlu0 %v1415_v56, %s2848_s26 }
 0x207   : > { %1570 = vrot.lane.b32.xlu1 %v1436_v57, %s2851_s25  ;;  %v1393_v57 = vld [vmem:[#allocation3 + $0xb0] sm:$0xff] }
 0x208   : > { %1568 = vrot.lane.b32.xlu0 %v1435_v58, %s2851_s25 }
 0x20b   : > { %1494 = vrot.lane.b32.xlu1 %v1418_v59, %s2848_s26  ;;  %v1394_v59 = vld [vmem:[#allocation3 + $0xc0] sm:$0xff] }
 0x20c   : > { %1492 = vrot.lane.b32.xlu0 %v1417_v60, %s2848_s26 }
 0x20f   : > { %1574 = vrot.lane.b32.xlu1 %v1438_v61, %s2851_s25 }
 0x210   : > { %1572 = vrot.lane.b32.xlu0 %v1437_v62, %s2851_s25 }
 0x213   : > { %1498 = vrot.lane.b32.xlu1 %v1420_v63, %s2848_s26 }
 0x214   : > { %1496 = vrot.lane.b32.xlu0 %v1419_v1, %s2848_s26 }
 0x217   : > { %1578 = vrot.lane.b32.xlu1 %v1440_v2, %s2851_s25 }
 0x218   : > { %1576 = vrot.lane.b32.xlu0 %v1439_v3, %s2851_s25 }
 0x21b   : > { %1542 = vrot.lane.b32.xlu1 %v1422_v4, %s2851_s25  ;;  %v1395_v4 = vld [vmem:[#allocation3 + $0xd0] sm:$0xff] }
 0x21c   : > { %1462 = vrot.lane.b32.xlu0 %v1402_v5, %s2848_s26 }
 0x21f   : > { %1562 = vrot.lane.b32.xlu1 %v1432_v6, %s2851_s25  ;;  %v1396_v6 = vld [vmem:[#allocation3 + $0xe0] sm:$0xff] }
 0x220   : > { %1482 = vrot.lane.b32.xlu0 %v1412_v8, %s2848_s26 }
 0x223   : > { %1560 = vrot.lane.b32.xlu1 %v1431_v9, %s2851_s25 }
 0x224   : > { %1480 = vrot.lane.b32.xlu0 %v1411_v10, %s2848_s26 }
 0x227   : > { %1580 = vrot.lane.b32.xlu1 %v1441_v11, %s2851_s25 }
 0x228   : > { %1500 = vrot.lane.b32.xlu0 %v1421_v12, %s2848_s26 }
 0x24d   : > { %v1467_v13 = vpop.permute.xlu1 %1466 }
 0x24e   : > { %v1465_v16 = vpop.permute.xlu0 %1464  ;;  %v1604_v22 = vsel %vm734_vm2, %v1384_v19, %v1467_v13  ;;  %v1398_v19 = vld [vmem:[#allocation3 + $0x100] sm:$0xff] }
 0x24f   : > { %v1603_v20 = vsel %vm734_vm2, %v1383_v17, %v1465_v16  ;;  %v1397_v17 = vld [vmem:[#allocation3 + $0xf0] sm:$0xff] }
 0x251   : > { %v1547_v18 = vpop.permute.xlu1 %1546 }
 0x252   : > { %v1545_v21 = vpop.permute.xlu0 %1544  ;;  %v3506_v26 = vsel %vm1622_vm8, %v1604_v22, %v1547_v18 }
 0x253   : > { %v3503_v23 = vsel %vm1622_vm8, %v1603_v20, %v1545_v21 }
 0x254   : > { %2646 = vmatprep.mubr.msk.f32.mxu1 %vm1650_vm9, %v3503_v23 }
 0x255   : > { %2647 = vmatmul.mubr.msk.f32.vlgmr.msra.gmra.mrb[0].mxu1 %vm1650_vm9, %v3506_v26  ;;  %v1471_v31 = vpop.permute.xlu1 %1470 }
 0x256   : > { %v1469_v32 = vpop.permute.xlu0 %1468  ;;  %2755 = vmatpush3.bf16.msra.mxu1 %v3469_v47  ;;  %v1606_v29 = vsel %vm734_vm2, %v1386_v38, %v1471_v31 }
 0x257   : > { %2674 = vmatprep.subr.mxu1 %v1645_v27  ;;  %v1605_v39 = vsel %vm734_vm2, %v1385_v34, %v1469_v32  ;;  %v1399_v32 = vld [vmem:[#allocation3 + $0x110] sm:$0xff] }
 0x259   : > { %v1551_v37 = vpop.permute.xlu1 %1550 }
 0x25a   : > { %v1549_v40 = vpop.permute.xlu0 %1548  ;;  %2675 = vmatpush3.msra.mxu1 %v1645_v27  ;;  %v3531_v14 = vsel %vm1622_vm8, %v1606_v29, %v1551_v37  ;;  %v1400_v37 = vld [vmem:[#allocation3 + $0x120] sm:$0xff] }
 0x25b   : > { %v3527_v7 = vsel %vm1622_vm8, %v1605_v39, %v1549_v40  ;;  %2757 = vmatprep.subr.bf16.mxu1 %v3522_v33 }
 0x25c   : > { %2649 = vmatprep.mubr.msk.f32.mxu1 %vm1650_vm9, %v3527_v7 }
 0x25d   : > { %2650 = vmatmul.mubr.msk.f32.gmra.mrb[2].mxu1 %vm1650_vm9, %v3531_v14  ;;  %v1475_v41 = vpop.permute.xlu1 %1474 }
 0x25e   : > { %v1473_v42 = vpop.permute.xlu0 %1472  ;;  %v1608_v43 = vsel %vm734_vm2, %v1388_v25, %v1475_v41 }
 0x25f   : > { %v1607_v35 = vsel %vm734_vm2, %v1387_v15, %v1473_v42  ;;  %v1382_v42 = vld [vmem:[#allocation3] sm:$0xff] }
 0x261   : > { %v1555_v24 = vpop.permute.xlu1 %1554 }
 0x262   : > { %v1553_v36 = vpop.permute.xlu0 %1552  ;;  %v3543_v46 = vsel %vm1622_vm8, %v1608_v43, %v1555_v24  ;;  %v1392_v43 = vld [vmem:[#allocation3 + $0xa0] sm:$0xff] }
 0x263   : > { %v3540_v45 = vsel %vm1622_vm8, %v1607_v35, %v1553_v36  ;;  %v2425_v36 = vld [vmem:[%s3686_s3 + $0x40] sm:$0xff] }
 0x264   : > { %2652 = vmatprep.mubr.msk.f32.mxu1 %vm1650_vm9, %v3540_v45 }
 0x265   : > { %2653 = vmatmul.mubr.msk.f32.gmra.mrb[4].mxu1 %vm1650_vm9, %v3543_v46  ;;  %v1479_v44 = vpop.permute.xlu1 %1478 }
 0x266   : > { %v1477_v47 = vpop.permute.xlu0 %1476  ;;  %v1610_v52 = vsel %vm734_vm2, %v1390_v50, %v1479_v44 }
 0x267   : > { %v1609_v0 = vsel %vm734_vm2, %v1389_v48, %v1477_v47 }
 0x269   : > { %v1559_v49 = vpop.permute.xlu1 %1558 }
 0x26a   : > { %v1557_v51 = vpop.permute.xlu0 %1556  ;;  %v3555_v54 = vsel %vm1622_vm8, %v1610_v52, %v1559_v49  ;;  %v2852_v52 = vmov 0  }
 0x26b   : > { %v3552_v53 = vsel %vm1622_vm8, %v1609_v0, %v1557_v51  ;;  %2838 = vset.pattern.permute.xlu0 %v2852_v52 }
 0x26c   : > { %2655 = vmatprep.mubr.msk.f32.mxu1 %vm1650_vm9, %v3552_v53 }
 0x26d   : > { %2656 = vmatmul.mubr.msk.f32.gmra.mrb[6].mxu1 %vm1650_vm9, %v3555_v54  ;;  %v1487_v55 = vpop.permute.xlu1 %1486 }
 0x26e   : > { %v1485_v56 = vpop.permute.xlu0 %1484  ;;  %v1614_v62 = vsel %vm734_vm2, %v1394_v59, %v1487_v55 }
 0x26f   : > { %v1613_v60 = vsel %vm734_vm2, %v1393_v57, %v1485_v56 }
 0x271   : > { %v1567_v58 = vpop.permute.xlu1 %1566 }
 0x272   : > { %v1565_v61 = vpop.permute.xlu0 %1564  ;;  %v3567_v1 = vsel %vm1622_vm8, %v1614_v62, %v1567_v58 }
 0x273   : > { %v3564_v63 = vsel %vm1622_vm8, %v1613_v60, %v1565_v61 }
 0x274   : > { %2658 = vmatprep.mubr.msk.f32.mxu1 %vm1650_vm9, %v3564_v63 }
 0x275   : > { %2659 = vmatmul.mubr.msk.f32.gmra.mrb[8].mxu1 %vm1650_vm9, %v3567_v1  ;;  %v1491_v2 = vpop.permute.xlu1 %1490 }
 0x276   : > { %v1489_v3 = vpop.permute.xlu0 %1488  ;;  %v1616_v10 = vsel %vm734_vm2, %v1396_v6, %v1491_v2 }
 0x277   : > { %v1615_v8 = vsel %vm734_vm2, %v1395_v4, %v1489_v3 }
 0x279   : > { %v1571_v5 = vpop.permute.xlu1 %1570 }
 0x27a   : > { %v1569_v9 = vpop.permute.xlu0 %1568  ;;  %v3579_v12 = vsel %vm1622_vm8, %v1616_v10, %v1571_v5 }
 0x27b   : > { %v3576_v11 = vsel %vm1622_vm8, %v1615_v8, %v1569_v9 }
 0x27c   : > { %2661 = vmatprep.mubr.msk.f32.mxu1 %vm1650_vm9, %v3576_v11 }
 0x27d   : > { %2662 = vmatmul.mubr.msk.f32.gmra.mrb[10].mxu1 %vm1650_vm9, %v3579_v12  ;;  %v1495_v13 = vpop.permute.xlu1 %1494 }
 0x27e   : > { %v1493_v16 = vpop.permute.xlu0 %1492  ;;  %v1618_v22 = vsel %vm734_vm2, %v1398_v19, %v1495_v13 }
 0x27f   : > { %v1617_v20 = vsel %vm734_vm2, %v1397_v17, %v1493_v16 }
 0x281   : > { %v1575_v18 = vpop.permute.xlu1 %1574 }
 0x282   : > { %v1573_v21 = vpop.permute.xlu0 %1572  ;;  %v3591_v28 = vsel %vm1622_vm8, %v1618_v22, %v1575_v18 }
 0x283   : > { %v3588_v27 = vsel %vm1622_vm8, %v1617_v20, %v1573_v21 }
 0x284   : > { %2664 = vmatprep.mubr.msk.f32.mxu1 %vm1650_vm9, %v3588_v27 }
 0x285   : > { %2665 = vmatmul.mubr.msk.f32.gmra.mrb[12].mxu1 %vm1650_vm9, %v3591_v28  ;;  %v1499_v30 = vpop.permute.xlu1 %1498 }
 0x286   : > { %v1497_v31 = vpop.permute.xlu0 %1496  ;;  %v1620_v40 = vsel %vm734_vm2, %v1400_v37, %v1499_v30 }
 0x287   : > { %v1619_v38 = vsel %vm734_vm2, %v1399_v32, %v1497_v31 }
 0x289   : > { %v1579_v34 = vpop.permute.xlu1 %1578 }
 0x28a   : > { %v1577_v39 = vpop.permute.xlu0 %1576  ;;  %v1641_v41 = vsel %vm1622_vm8, %v1620_v40, %v1579_v34 }
 0x28b   : > { %v1640_v29 = vsel %vm1622_vm8, %v1619_v38, %v1577_v39 }
 0x28c   : > { %2667 = vmatprep.mubr.msk.f32.mxu1 %vm1650_vm9, %v1640_v29 }
 0x28d   : > { %2668 = vmatmul.mubr.msk.f32.gmra.mrb[14].mxu1 %vm1650_vm9, %v1641_v41  ;;  %v1543_v15 = vpop.permute.xlu1 %1542 }
 0x28e   : > { %v1463_v24 = vpop.permute.xlu0 %1462 }
 0x28f   : > { %v1602_v25 = vsel %vm734_vm2, %v1382_v42, %v1463_v24 }
 0x290   : > { %v1623_v35 = vsel %vm1622_vm8, %v1602_v25, %v1543_v15 }
 0x291   : > { %2676 = vmatprep.mubr.msk.f32.mxu1 %vm1650_vm9, %v1623_v35  ;;  %v1563_v48 = vpop.permute.xlu1 %1562 }
 0x292   : > { %2677 = vmatmul.mubr.msk.f32.vlgmr.msra.gmra.mrb[0].mxu1 %vm1650_vm9, %v3503_v23  ;;  %v1483_v44 = vpop.permute.xlu0 %1482 }
 0x293   : > { %2759 = vmatpush3.bf16.msra.mxu1 %v3522_v33  ;;  %2679 = vmatprep.mubr.msk.f32.mxu1 %vm1650_vm9, %v3506_v26  ;;  %v1612_v47 = vsel %vm734_vm2, %v1392_v43, %v1483_v44  ;;  %v1391_v33 = vld [vmem:[#allocation3 + $0x90] sm:$0xff] }
 0x294   : > { %2704 = vmatprep.subr.mxu1 %v2425_v36  ;;  %v1633_v23 = vsel %vm1622_vm8, %v1612_v47, %v1563_v48 }
 0x295   : > { %v1561_v0 = vpop.permute.xlu1 %1560 }
 0x296   : > { %2680 = vmatmul.mubr.msk.f32.gmra.mrb[2].mxu1 %vm1650_vm9, %v3527_v7  ;;  %v1481_v49 = vpop.permute.xlu0 %1480 }
 0x297   : > { %2682 = vmatprep.mubr.msk.f32.mxu1 %vm1650_vm9, %v3531_v14  ;;  %2705 = vmatpush3.msra.mxu1 %v2425_v36  ;;  %v1611_v50 = vsel %vm734_vm2, %v1391_v33, %v1481_v49 }
 0x29a   : > { %2683 = vmatmul.mubr.msk.f32.gmra.mrb[4].mxu1 %vm1650_vm9, %v3540_v45 }
 0x29b   : > { %2685 = vmatprep.mubr.msk.f32.mxu1 %vm1650_vm9, %v3543_v46 }
 0x29e   : > { %2686 = vmatmul.mubr.msk.f32.gmra.mrb[6].mxu1 %vm1650_vm9, %v3552_v53 }
 0x29f   : > { %2688 = vmatprep.mubr.msk.f32.mxu1 %vm1650_vm9, %v1633_v23 }
 0x2a2   : > { %2689 = vmatmul.mubr.msk.f32.gmra.mrb[8].mxu1 %vm1650_vm9, %v3564_v63 }
 0x2a3   : > { %2691 = vmatprep.mubr.msk.f32.mxu1 %vm1650_vm9, %v3567_v1 }
 0x2a6   : > { %2692 = vmatmul.mubr.msk.f32.gmra.mrb[10].mxu1 %vm1650_vm9, %v3576_v11 }
 0x2a7   : > { %2694 = vmatprep.mubr.msk.f32.mxu1 %vm1650_vm9, %v3579_v12 }
 0x2aa   : > { %2695 = vmatmul.mubr.msk.f32.gmra.mrb[12].mxu1 %vm1650_vm9, %v3588_v27 }
 0x2ab   : > { %2697 = vmatprep.mubr.msk.f32.mxu1 %vm1650_vm9, %v3591_v28 }
 0x2ae   : > { %2698 = vmatmul.mubr.msk.f32.gmra.mrb[14].mxu1 %vm1650_vm9, %v1640_v29 }
 0x2af   : > { %2706 = vmatprep.mubr.msk.f32.mxu1 %vm1650_vm9, %v3506_v26  ;;  %v1632_v26 = vsel %vm1622_vm8, %v1611_v50, %v1561_v0 }
 0x2b2   : > { %2707 = vmatmul.mubr.msk.f32.vlgmr.msra.gmra.mrb[0].mxu1 %vm1650_vm9, %v3527_v7  ;;  %v1401_v7 = vld [vmem:[#allocation3 + $0x130] sm:$0xff] }
 0x2b3   : > { %2709 = vmatprep.mubr.msk.f32.mxu1 %vm1650_vm9, %v3531_v14  ;;  %v1501_v14 = vpop.permute.xlu0 %1500 }
 0x2b6   : > { %2710 = vmatmul.mubr.msk.f32.gmra.mrb[2].mxu1 %vm1650_vm9, %v3540_v45  ;;  %v1621_v45 = vsel %vm734_vm2, %v1401_v7, %v1501_v14 }
 0x2b7   : > { %2712 = vmatprep.mubr.msk.f32.mxu1 %vm1650_vm9, %v3543_v46  ;;  %v1581_v46 = vpop.permute.xlu1 %1580 }
 0x2b8   : > { %v1642_v51 = vsel %vm1622_vm8, %v1621_v45, %v1581_v46 }
 0x2ba   : > { %2713 = vmatmul.mubr.msk.f32.gmra.mrb[4].mxu1 %vm1650_vm9, %v3552_v53  ;;  %v2198_v53 = vld [vmem:[%s3687_s4] sm:$0xff] }
 0x2bb   : > { %2715 = vmatprep.mubr.msk.f32.mxu1 %vm1650_vm9, %v3555_v54  ;;  %2201 = vperm.xlu0 %2838, %v2198_v53  }
 0x2be   : > { %2716 = vmatmul.mubr.msk.f32.gmra.mrb[6].mxu1 %vm1650_vm9, %v1632_v26 }
 0x2bf   : > { %2718 = vmatprep.mubr.msk.f32.mxu1 %vm1650_vm9, %v3567_v1 }
 0x2c2   : > { %2719 = vmatmul.mubr.msk.f32.gmra.mrb[8].mxu1 %vm1650_vm9, %v3576_v11 }
 0x2c3   : > { %2721 = vmatprep.mubr.msk.f32.mxu1 %vm1650_vm9, %v3579_v12 }
 0x2c6   : > { %2722 = vmatmul.mubr.msk.f32.gmra.mrb[10].mxu1 %vm1650_vm9, %v3588_v27 }
 0x2c7   : > { %2724 = vmatprep.mubr.msk.f32.mxu1 %vm1650_vm9, %v3591_v28 }
 0x2ca   : > { %2725 = vmatmul.mubr.msk.f32.gmra.mrb[12].mxu1 %vm1650_vm9, %v1640_v29 }
 0x2cb   : > { %2727 = vmatprep.mubr.msk.f32.mxu1 %vm1650_vm9, %v1641_v41 }
 0x2ce   : > { %2728 = vmatmul.mubr.msk.f32.gmra.mrb[14].mxu1 %vm1650_vm9, %v1642_v51 }
 0x33a   : > { %v2202_v8 = vpop.permute.xlu0 %2201 }
 0x385   : > { %v2708_v54 = vpop.f32.mrb[0].mxu1 }
 0x386   : > { %v2071_v55 = vpop.f32.mrb[1].mxu1 }
 0x387   : > { %2166 = vxpose.xlu1.b32.start [1/16] (narrow) %v2071_v55, 8 }
 0x389   : > { %v2711_v56 = vpop.f32.mrb[2].mxu1 }
 0x38a   : > { %v2081_v57 = vpop.f32.mrb[3].mxu1 }
 0x38b   : > { %2167 = vxpose.xlu1.b32.cont [2/16] (narrow) %v2708_v54, 8 }
 0x38d   : > { %v2714_v58 = vpop.f32.mrb[4].mxu1 }
 0x38e   : > { %v2091_v59 = vpop.f32.mrb[5].mxu1 }
 0x38f   : > { %2168 = vxpose.xlu1.b32.cont [3/16] (narrow) %v2081_v57, 8 }
 0x391   : > { %v2717_v60 = vpop.f32.mrb[6].mxu1 }
 0x392   : > { %v2101_v61 = vpop.f32.mrb[7].mxu1 }
 0x393   : > { %2169 = vxpose.xlu1.b32.cont [4/16] (narrow) %v2711_v56, 8 }
 0x395   : > { %v2720_v62 = vpop.f32.mrb[8].mxu1 }
 0x396   : > { %v2111_v63 = vpop.f32.mrb[9].mxu1 }
 0x397   : > { %2170 = vxpose.xlu1.b32.cont [5/16] (narrow) %v2091_v59, 8 }
 0x399   : > { %v2723_v1 = vpop.f32.mrb[10].mxu1 }
 0x39a   : > { %v2121_v2 = vpop.f32.mrb[11].mxu1 }
 0x39b   : > { %2171 = vxpose.xlu1.b32.cont [6/16] (narrow) %v2714_v58, 8 }
 0x39d   : > { %v2726_v3 = vpop.f32.mrb[12].mxu1 }
 0x39e   : > { %v2131_v4 = vpop.f32.mrb[13].mxu1 }
 0x39f   : > { %2172 = vxpose.xlu1.b32.cont [7/16] (narrow) %v2101_v61, 8 }
 0x3a1   : > { %v2729_v5 = vpop.f32.mrb[14].mxu1 }
 0x3a2   : > { %v2141_v6 = vpop.f32.mrb[15].mxu1 }
 0x3a3   : > { %2173 = vxpose.xlu1.b32.cont [8/16] (narrow) %v2717_v60, 8 }
 0x3a7   : > { %2174 = vxpose.xlu1.b32.cont [9/16] (narrow) %v2111_v63, 8 }
 0x3ab   : > { %2175 = vxpose.xlu1.b32.cont [10/16] (narrow) %v2720_v62, 8 }
 0x3af   : > { %2176 = vxpose.xlu1.b32.cont [11/16] (narrow) %v2121_v2, 8 }
 0x3b3   : > { %2177 = vxpose.xlu1.b32.cont [12/16] (narrow) %v2723_v1, 8 }
 0x3b7   : > { %2178 = vxpose.xlu1.b32.cont [13/16] (narrow) %v2131_v4, 8 }
 0x3bb   : > { %2179 = vxpose.xlu1.b32.cont [14/16] (narrow) %v2726_v3, 8 }
 0x3bf   : > { %2180 = vxpose.xlu1.b32.cont [15/16] (narrow) %v2141_v6, 8 }
 0x3c3   : > { %2181 = vxpose.xlu1.b32.end [16/16] (narrow) %v2729_v5, 8 }
 0x407   : > { %v2182_v9 = vpop.trf.xlu1 }
 0x408   : > { %v2204_v10 = vadd.f32 %v2202_v8, %v2182_v9 }
 0x40a   : > { %v2205_v11 = vmax.f32 %v2204_v10, 0.0 }
 0x40c   : > { %2206 = vst [vmem:[%s227_s20] sm:$0xff] %v2205_v11 }
 0x40d PF: > { %s15_s18 = sadd.s32 1, %s2845_s18  }
 0x40e   : > { %p12_p5 = scmp.ge.s32.totalorder %s15_s18, 6  }
 0x410   :  { %14 = sbr.rel (!%p12_p5) target bundleno = 1 (0x1), region = 139 }

</bundles_post_ra>
